<compile_context>
chip_gen: v7x
topology: tpu7x:2x2x1
jax: 0.10.0
libtpu: 0.0.40
codegen_flags: <defaults>
</compile_context>

<pallas_src>
import jax
import jax.numpy as jnp
from jax import lax
from jax.experimental import pallas as pl
from jax.experimental.pallas import tpu as pltpu


def _round_up(n, m):
    return ((n + m - 1) // m) * m


def _graph_rnn_kernel(x_ref, w_in_ref, b_in_ref, w_ih0_ref, b_gx0_ref,
                      w_gh_ref, b_gh_ref, w_gx_ref, b_gx_ref,
                      w_o1_ref, b_o1_ref, w_o2_ref, b_o2_ref,
                      out_ref, h_ref, gx0_scr, y_scr):
    """One grid step = (batch shard s, time chunk c).

    Row layout inside a shard/chunk: row = t * Bp + b_local (Bp % 8 == 0).

    Shapes inside the kernel:
      x_ref    : (1, rows, IF)       rows = T*Bp
      w_in_ref : (IF, Ep)   b_in_ref : (1, Ep)
      w_ih0_ref: (Ep, 3Hp)  b_gx0_ref: (1, 3Hp)   (b_ih0 + b_hh0[r,z] folded)
      w_gh_ref : (L, Hp, 3Hp)  b_gh_ref: (L, 1, 3Hp)   hidden->[r|z|n_h]
      w_gx_ref : (max(L-1,1), Hp, 3Hp)  b_gx_ref: (max(L-1,1), 1, 3Hp)
      w_o1_ref : (Hp, Ep)   b_o1_ref : (1, Ep)
      w_o2_ref : (Ep, Op)   b_o2_ref : (1, Op)
      out_ref  : (1, rows, Op)
      h_ref    : (1, L, Bp, Hp) f32   hidden carry, revisited across chunks
      gx0_scr  : (rows, 3Hp) f32      hoisted layer-0 input gates
      y_scr    : (rows, Hp)  f32      last-layer GRU outputs for the chunk
    """
    _, L, Bp, Hp = h_ref.shape
    rows = y_scr.shape[0]
    T = rows // Bp
    mxu = w_in_ref.dtype
    f32 = jnp.float32

    # self.hidden = None  ->  zeros at the first chunk of this shard.
    @pl.when(pl.program_id(1) == 0)
    def _():
        h_ref[...] = jnp.zeros_like(h_ref)

    # ---- hoisted, time-independent matmuls over the whole chunk ----
    emb = jnp.maximum(
        jnp.dot(x_ref[0].astype(mxu), w_in_ref[...],
                preferred_element_type=f32) + b_in_ref[...], 0.0)
    gx0_scr[...] = (jnp.dot(emb.astype(mxu), w_ih0_ref[...],
                            preferred_element_type=f32) + b_gx0_ref[...])

    # Hoist bias loads + broadcasts out of the recurrence (JAX does not CSE
    # broadcast_in_dim; keep them off the serial path).
    b_gh_all = b_gh_ref[...]                       # (L, 1, 3Hp)
    b_gx_all = b_gx_ref[...]                       # (max(L-1,1), 1, 3Hp)
    b_gh_rows = [jnp.broadcast_to(b_gh_all[l], (Bp, 3 * Hp)) for l in range(L)]
    b_gx_rows = [jnp.broadcast_to(b_gx_all[l], (Bp, 3 * Hp))
                 for l in range(L - 1)]

    def gru_cell(gx, gh, h_prev):
        r = jax.nn.sigmoid(gx[:, 0:Hp] + gh[:, 0:Hp])
        z = jax.nn.sigmoid(gx[:, Hp:2 * Hp] + gh[:, Hp:2 * Hp])
        n = jnp.tanh(gx[:, 2 * Hp:3 * Hp] + r * gh[:, 2 * Hp:3 * Hp])
        return (1.0 - z) * n + z * h_prev

    def step(t, h):
        row = t * Bp
        if not isinstance(row, int):
            row = pl.multiple_of(row, 8)           # Bp % 8 == 0 -> aligned tiles
        # All hidden->gate matmuls depend only on step t-1's state: issue them
        # up front, off the serial inter-layer chain (review #1).
        gh = [jnp.dot(h[l].astype(mxu), w_gh_ref[l],
                      preferred_element_type=f32) + b_gh_rows[l]
              for l in range(L)]
        # Layer 0: input gates were hoisted (gx0_scr); only gates + blend here.
        inp = gru_cell(gx0_scr[pl.ds(row, Bp), :], gh[0], h[0])
        new_h = [inp]
        # Layers > 0: one x->gates matmul per layer stays on the serial chain.
        for l in range(1, L):
            gx = (jnp.dot(inp.astype(mxu), w_gx_ref[l - 1],
                          preferred_element_type=f32) + b_gx_rows[l - 1])
            inp = gru_cell(gx, gh[l], h[l])
            new_h.append(inp)
        y_scr[pl.ds(row, Bp), :] = inp
        return tuple(new_h)

    # ---- serial recurrence, partially unrolled (review #3) ----
    UNROLL = 2
    h = tuple(h_ref[0, l] for l in range(L))
    n_main = (T // UNROLL) * UNROLL
    if n_main > 0:
        def unrolled_body(i, hh):
            base = i * UNROLL
            for u in range(UNROLL):
                hh = step(base + u, hh)
            return hh
        h = lax.fori_loop(0, T // UNROLL, unrolled_body, h)
    for t in range(n_main, T):                     # static tail (T is static)
        h = step(t, h)
    for l in range(L):
        h_ref[0, l] = h[l]

    # ---- hoisted output head over the whole chunk ----
    y = jnp.maximum(
        jnp.dot(y_scr[...].astype(mxu), w_o1_ref[...],
                preferred_element_type=f32) + b_o1_ref[...], 0.0)
    out = (jnp.dot(y.astype(mxu), w_o2_ref[...],
                   preferred_element_type=f32) + b_o2_ref[...])
    out_ref[0] = out.astype(out_ref.dtype)


def prepare_params(params, dtype=jnp.float32):
    """One-time weight prep: transpose, pad gate blocks to 128-lane multiples,
    split x-part / h-part gate weights, fold r/z hidden biases into the
    (hoistable) x-part biases.  Pass dtype=jnp.bfloat16 for the bf16 MXU path
    on v6e/v7x (biases / gate math stay f32)."""
    f32 = jnp.float32
    w_in_p = params["w_in"]                        # (E, IF)
    E, IF = w_in_p.shape
    w_ih, w_hh = params["w_ih"], params["w_hh"]    # (L, 3H, in), (L, 3H, H)
    b_ih, b_hh = params["b_ih"], params["b_hh"]    # (L, 3H)
    L = w_hh.shape[0]
    H = w_hh.shape[2]
    O = params["w_o2"].shape[0]

    LANE = 128
    Hp, Ep, Op = _round_up(H, LANE), _round_up(E, LANE), _round_up(O, LANE)

    def padc(w, cols):
        return jnp.pad(w, ((0, 0), (0, cols - w.shape[1])))

    def padr(w, rows):
        return jnp.pad(w, ((0, rows - w.shape[0]), (0, 0)))

    def pad1(b, n):
        return jnp.pad(b, (0, n - b.shape[0]))

    def gate_w(w, rows_p):        # (3H, in) -> (rows_p, 3Hp): [Wr^T|Wz^T|Wn^T]
        blocks = [padc(w[g * H:(g + 1) * H].T.astype(f32), Hp) for g in range(3)]
        return padr(jnp.concatenate(blocks, axis=1), rows_p)

    def gx_bias(l):               # r/z biases of both ih and hh folded here
        return jnp.concatenate([
            pad1((b_ih[l, 0:H] + b_hh[l, 0:H]).astype(f32), Hp),
            pad1((b_ih[l, H:2 * H] + b_hh[l, H:2 * H]).astype(f32), Hp),
            pad1(b_ih[l, 2 * H:3 * H].astype(f32), Hp)]).reshape(1, 3 * Hp)

    def gh_bias(l):               # only b_hn stays with gh (n = tanh(. + r*(gh_n)))
        return jnp.concatenate([
            jnp.zeros((2 * Hp,), f32),
            pad1(b_hh[l, 2 * H:3 * H].astype(f32), Hp)]).reshape(1, 3 * Hp)

    w_in = padc(w_in_p.T.astype(f32), Ep)                        # (IF, Ep)
    b_in = pad1(params["b_in"].astype(f32), Ep).reshape(1, Ep)

    w_ih0 = gate_w(w_ih[0], Ep)                                  # (Ep, 3Hp)
    b_gx0 = gx_bias(0)                                           # (1, 3Hp)

    w_gh = jnp.stack([gate_w(w_hh[l], Hp) for l in range(L)])    # (L, Hp, 3Hp)
    b_gh = jnp.stack([gh_bias(l) for l in range(L)])             # (L, 1, 3Hp)

    if L > 1:
        w_gx = jnp.stack([gate_w(w_ih[l], Hp) for l in range(1, L)])
        b_gx = jnp.stack([gx_bias(l) for l in range(1, L)])
    else:
        w_gx = jnp.zeros((1, Hp, 3 * Hp), f32)                   # unused dummy
        b_gx = jnp.zeros((1, 1, 3 * Hp), f32)

    w_o1 = padr(padc(params["w_o1"].T.astype(f32), Ep), Hp)      # (Hp, Ep)
    b_o1 = pad1(params["b_o1"].astype(f32), Ep).reshape(1, Ep)
    w_o2 = padr(padc(params["w_o2"].T.astype(f32), Op), Ep)      # (Ep, Op)
    b_o2 = pad1(params["b_o2"].astype(f32), Op).reshape(1, Op)

    weights = {
        "w_in": w_in.astype(dtype), "b_in": b_in,
        "w_ih0": w_ih0.astype(dtype), "b_gx0": b_gx0,
        "w_gh": w_gh.astype(dtype), "b_gh": b_gh,
        "w_gx": w_gx.astype(dtype), "b_gx": b_gx,
        "w_o1": w_o1.astype(dtype), "b_o1": b_o1,
        "w_o2": w_o2.astype(dtype), "b_o2": b_o2,
    }
    meta = dict(L=L, H=H, Hp=Hp, E=E, Ep=Ep, O=O, Op=Op, IF=IF)
    return weights, meta


def graph_level_rnn_forward(x, weights, meta, *, t_chunk=64, core_shards=1):
    """x: [B, S, input_size, edge_feature_len] f32 -> [B, S, output_size] f32.

    core_shards: number of batch shards mapped to a leading "parallel" grid
    axis (use 2 on v7x to occupy both TensorCores; 1 elsewhere)."""
    B, S, I, F = x.shape
    IF = I * F
    assert IF == meta["IF"]
    L, Hp, Ep = meta["L"], meta["Hp"], meta["Ep"]
    Op, O = meta["Op"], meta["O"]

    nb = core_shards
    assert B % nb == 0, "batch must divide evenly across core shards"
    Bs = B // nb
    # Sublane-pad the per-shard batch so every per-step scratch access is an
    # unmasked full-(8,128)-tile op (free for the recurrence: MXU/vreg
    # granularity is 8 sublanes anyway).
    Bp = _round_up(Bs, 8)

    tc = max(1, min(t_chunk, S))
    S_pad = _round_up(S, tc)
    n_chunks = S_pad // tc
    rows = tc * Bp                                 # always a multiple of 8

    # Time-major, batch-padded layout per shard: row = t*Bp + b_local.
    # Padded (fake) rows only touch their own (discarded) hidden lanes.
    xf = x.reshape(B, S, IF).reshape(nb, Bs, S, IF)
    xf = jnp.pad(xf, ((0, 0), (0, Bp - Bs), (0, S_pad - S), (0, 0)))
    x3 = xf.transpose(0, 2, 1, 3).reshape(nb, S_pad * Bp, IF)

    w = weights

    def full(a):
        nd = a.ndim
        return pl.BlockSpec(a.shape, lambda s, c: (0,) * nd)

    # VMEM budget (review #5) and scheduler cost hint (review #11).
    w_bytes = sum(int(v.size) * v.dtype.itemsize for v in w.values())
    blk_bytes = 4 * rows * (IF + Op) + 4 * L * Bp * Hp
    scr_bytes = 4 * rows * (4 * Hp)
    vmem_limit = int(min(max(2 * (w_bytes + blk_bytes) + scr_bytes + (8 << 20),
                             32 << 20), 64 << 20))

    total_rows = nb * S_pad * Bp
    flops = 2 * total_rows * (IF * Ep + Ep * 3 * Hp + L * Hp * 3 * Hp
                              + (L - 1) * Hp * 3 * Hp + Hp * Ep + Ep * Op)
    cost = pl.CostEstimate(
        flops=int(flops),
        transcendentals=int(total_rows * L * 3 * Hp),
        bytes_accessed=int(4 * total_rows * (IF + Op) + w_bytes))

    out3, _hidden = pl.pallas_call(
        _graph_rnn_kernel,
        out_shape=(jax.ShapeDtypeStruct((nb, S_pad * Bp, Op), jnp.float32),
                   jax.ShapeDtypeStruct((nb, L, Bp, Hp), jnp.float32)),
        grid_spec=pltpu.PrefetchScalarGridSpec(
            num_scalar_prefetch=0,
            grid=(nb, n_chunks),
            in_specs=[
                pl.BlockSpec((1, rows, IF), lambda s, c: (s, c, 0)),
                full(w["w_in"]), full(w["b_in"]),
                full(w["w_ih0"]), full(w["b_gx0"]),
                full(w["w_gh"]), full(w["b_gh"]),
                full(w["w_gx"]), full(w["b_gx"]),
                full(w["w_o1"]), full(w["b_o1"]),
                full(w["w_o2"]), full(w["b_o2"]),
            ],
            out_specs=[
                pl.BlockSpec((1, rows, Op), lambda s, c: (s, c, 0)),
                # Hidden carry: per-shard block, resident across the chunk axis.
                pl.BlockSpec((1, L, Bp, Hp), lambda s, c: (s, 0, 0, 0)),
            ],
            scratch_shapes=[
                pltpu.VMEM((rows, 3 * Hp), jnp.float32),   # hoisted layer-0 gates
                pltpu.VMEM((rows, Hp), jnp.float32),       # last-layer outputs
            ],
        ),
        compiler_params=pltpu.CompilerParams(
            dimension_semantics=("parallel", "arbitrary"),
            vmem_limit_bytes=vmem_limit),
        cost_estimate=cost,
    )(x3, w["w_in"], w["b_in"], w["w_ih0"], w["b_gx0"],
      w["w_gh"], w["b_gh"], w["w_gx"], w["b_gx"],
      w["w_o1"], w["b_o1"], w["w_o2"], w["b_o2"])

    out = out3.reshape(nb, S_pad, Bp, Op)[:, :S, :Bs, :O]
    return out.transpose(0, 2, 1, 3).reshape(B, S, O)


def _init_params(key, input_size, edge_feature_len, embedding_size,
                 hidden_size, num_layers, output_size):
    IF = input_size * edge_feature_len
    E, H, L, O = embedding_size, hidden_size, num_layers, output_size
    ks = jax.random.split(key, 10)
    s = 0.1
    return {
        "w_in":  s * jax.random.normal(ks[0], (E, IF), jnp.float32),
        "b_in":  s * jax.random.normal(ks[1], (E,), jnp.float32),
        # GRU weights stacked over layers (layer-0 input dim == E == H here)
        "w_ih":  s * jax.random.normal(ks[2], (L, 3 * H, E), jnp.float32),
        "w_hh":  s * jax.random.normal(ks[3], (L, 3 * H, H), jnp.float32),
        "b_ih":  s * jax.random.normal(ks[4], (L, 3 * H), jnp.float32),
        "b_hh":  s * jax.random.normal(ks[5], (L, 3 * H), jnp.float32),
        "w_o1":  s * jax.random.normal(ks[6], (E, H), jnp.float32),
        "b_o1":  s * jax.random.normal(ks[7], (E,), jnp.float32),
        "w_o2":  s * jax.random.normal(ks[8], (O, E), jnp.float32),
        "b_o2":  s * jax.random.normal(ks[9], (O,), jnp.float32),
    }


def _ref_forward(x, p):
    """Pure-JAX reference matching PyTorch GraphLevelRNN semantics (x_lens=None)."""
    B, S, I, F = x.shape
    L, threeH, _ = p["w_ih"].shape
    H = threeH // 3
    xf = x.reshape(B, S, I * F)
    emb = jax.nn.relu(xf @ p["w_in"].T + p["b_in"])
    h = jnp.zeros((L, B, H), jnp.float32)
    outs = []
    for t in range(S):
        inp = emb[:, t]
        new_h = []
        for l in range(L):
            gx = inp @ p["w_ih"][l].T + p["b_ih"][l]
            gh = h[l] @ p["w_hh"][l].T + p["b_hh"][l]
            r = jax.nn.sigmoid(gx[:, :H] + gh[:, :H])
            z = jax.nn.sigmoid(gx[:, H:2 * H] + gh[:, H:2 * H])
            n = jnp.tanh(gx[:, 2 * H:] + r * gh[:, 2 * H:])
            hn = (1.0 - z) * n + z * h[l]
            new_h.append(hn)
            inp = hn
        h = jnp.stack(new_h)
        outs.append(inp)
    y = jnp.stack(outs, axis=1)
    y = jax.nn.relu(y @ p["w_o1"].T + p["b_o1"]) @ p["w_o2"].T + p["b_o2"]
    return y


if __name__ == "__main__":
    # Small shapes consistent with the module's forward.
    batch, seq_len = 2, 8
    input_size, edge_feature_len = 16, 1
    embedding_size, hidden_size, num_layers = 32, 32, 2
    output_size = 16

    key = jax.random.PRNGKey(0)
    k_x, k_p = jax.random.split(key)
    x = jax.random.uniform(
        k_x, (batch, seq_len, input_size, edge_feature_len), jnp.float32)
    params = _init_params(k_p, input_size, edge_feature_len, embedding_size,
                          hidden_size, num_layers, output_size)

    # One-time parameter prep (f32 here so the reference check is exact; pass
    # dtype=jnp.bfloat16 on v6e/v7x for the bf16 MXU path).
    weights, meta = prepare_params(params)
    ref = _ref_forward(x, params)

    # Exercise both the single-core path and the v7x dual-TC (batch-sharded
    # "parallel" axis) path.
    for shards in (1, 2):
        fwd = jax.jit(lambda xx, ww, s=shards: graph_level_rnn_forward(
            xx, ww, meta, t_chunk=64, core_shards=s))
        out = jax.block_until_ready(fwd(x, weights))
        assert out.shape == (batch, seq_len, output_size)
        err = float(jnp.max(jnp.abs(out - ref)))
        assert jnp.allclose(out, ref, atol=1e-4, rtol=1e-4), \
            f"core_shards={shards}: max abs err {err}"

    print("KERNEL_OK")
</pallas_src>

<mosaic_0001>
module attributes {stable_mosaic.version = 11 : i64} {
  func.func @_graph_rnn_kernel(%arg0: i32, %arg1: i32, %arg2: memref<1x64x16xf32, #tpu.memory_space<vmem>>, %arg3: memref<16x128xf32, #tpu.memory_space<vmem>>, %arg4: memref<1x128xf32, #tpu.memory_space<vmem>>, %arg5: memref<128x384xf32, #tpu.memory_space<vmem>>, %arg6: memref<1x384xf32, #tpu.memory_space<vmem>>, %arg7: memref<2x128x384xf32, #tpu.memory_space<vmem>>, %arg8: memref<2x1x384xf32, #tpu.memory_space<vmem>>, %arg9: memref<1x128x384xf32, #tpu.memory_space<vmem>>, %arg10: memref<1x1x384xf32, #tpu.memory_space<vmem>>, %arg11: memref<128x128xf32, #tpu.memory_space<vmem>>, %arg12: memref<1x128xf32, #tpu.memory_space<vmem>>, %arg13: memref<128x128xf32, #tpu.memory_space<vmem>>, %arg14: memref<1x128xf32, #tpu.memory_space<vmem>>, %arg15: memref<1x64x128xf32, #tpu.memory_space<vmem>>, %arg16: memref<1x2x8x128xf32, #tpu.memory_space<vmem>>, %arg17: memref<64x384xf32, #tpu.memory_space<vmem>>, %arg18: memref<64x128xf32, #tpu.memory_space<vmem>>) attributes {dimension_semantics = [#tpu.dimension_semantics<parallel>, #tpu.dimension_semantics<arbitrary>], iteration_bounds = array<i64: 1, 1>, scalar_prefetch = 0 : i64, scratch_operands = 2 : i64, tpu.core_type = #tpu.core_type<tc>, window_params = [{transform_indices = @transform_0, window_bounds = array<i64: 1, 64, 16>}, {pipeline_mode = #tpu.pipeline_mode<synchronous>, transform_indices = @transform_1, window_bounds = array<i64: 16, 128>}, {pipeline_mode = #tpu.pipeline_mode<synchronous>, transform_indices = @transform_2, window_bounds = array<i64: 1, 128>}, {pipeline_mode = #tpu.pipeline_mode<synchronous>, transform_indices = @transform_3, window_bounds = array<i64: 128, 384>}, {pipeline_mode = #tpu.pipeline_mode<synchronous>, transform_indices = @transform_4, window_bounds = array<i64: 1, 384>}, {pipeline_mode = #tpu.pipeline_mode<synchronous>, transform_indices = @transform_5, window_bounds = array<i64: 2, 128, 384>}, {pipeline_mode = #tpu.pipeline_mode<synchronous>, transform_indices = @transform_6, window_bounds = array<i64: 2, 1, 384>}, {pipeline_mode = #tpu.pipeline_mode<synchronous>, transform_indices = @transform_7, window_bounds = array<i64: 1, 128, 384>}, {pipeline_mode = #tpu.pipeline_mode<synchronous>, transform_indices = @transform_8, window_bounds = array<i64: 1, 1, 384>}, {pipeline_mode = #tpu.pipeline_mode<synchronous>, transform_indices = @transform_9, window_bounds = array<i64: 128, 128>}, {pipeline_mode = #tpu.pipeline_mode<synchronous>, transform_indices = @transform_10, window_bounds = array<i64: 1, 128>}, {pipeline_mode = #tpu.pipeline_mode<synchronous>, transform_indices = @transform_11, window_bounds = array<i64: 128, 128>}, {pipeline_mode = #tpu.pipeline_mode<synchronous>, transform_indices = @transform_12, window_bounds = array<i64: 1, 128>}, {transform_indices = @transform_13, window_bounds = array<i64: 1, 64, 128>}, {transform_indices = @transform_14, window_bounds = array<i64: 1, 2, 8, 128>}]} {
    %c0_i32 = arith.constant 0 : i32
    %0 = arith.cmpi eq, %arg1, %c0_i32 : i32
    %1 = arith.extui %0 : i1 to i32
    %c0_i32_0 = arith.constant 0 : i32
    %2 = arith.cmpi ne, %1, %c0_i32_0 : i32
    scf.if %2 {
      %cst_54 = arith.constant 0.000000e+00 : f32
      %59 = vector.broadcast %cst_54 : f32 to vector<1x2x8x128xf32>
      %c0_55 = arith.constant 0 : index
      %c0_56 = arith.constant 0 : index
      %c0_57 = arith.constant 0 : index
      %c0_58 = arith.constant 0 : index
      %60 = vector.load %arg16[%c0_55, %c0_56, %c0_57, %c0_58] : memref<1x2x8x128xf32, #tpu.memory_space<vmem>>, vector<1x2x8x128xf32>
      tpu.vector_store %arg16[%c0_55, %c0_56, %c0_57, %c0_58], %59 {strides = array<i32>} : memref<1x2x8x128xf32, #tpu.memory_space<vmem>>, vector<1x2x8x128xf32>,
    } else {
    }
    %c0 = arith.constant 0 : index
    %c0_1 = arith.constant 0 : index
    %c0_2 = arith.constant 0 : index
    %3 = vector.load %arg2[%c0, %c0_1, %c0_2] : memref<1x64x16xf32, #tpu.memory_space<vmem>>, vector<1x64x16xf32>
    %4 = vector.shape_cast %3 : vector<1x64x16xf32> to vector<64x16xf32>
    %c0_3 = arith.constant 0 : index
    %c0_4 = arith.constant 0 : index
    %5 = vector.load %arg3[%c0_3, %c0_4] : memref<16x128xf32, #tpu.memory_space<vmem>>, vector<16x128xf32>
    %cst = arith.constant dense<0.000000e+00> : vector<64x128xf32>
    %6 = tpu.matmul %4, %5, %cst {dimension_numbers = #tpu.dot_dimension_numbers<[1], [0], [0], [1], [0, 0, 1, 1], [], []>} : vector<64x16xf32>, vector<16x128xf32>, vector<64x128xf32> -> vector<64x128xf32>
    %c0_5 = arith.constant 0 : index
    %c0_6 = arith.constant 0 : index
    %7 = vector.load %arg4[%c0_5, %c0_6] : memref<1x128xf32, #tpu.memory_space<vmem>>, vector<1x128xf32>
    %8 = vector.broadcast %7 : vector<1x128xf32> to vector<64x128xf32>
    %9 = arith.addf %6, %8 : vector<64x128xf32>
    %cst_7 = arith.constant 0.000000e+00 : f32
    %10 = vector.broadcast %cst_7 : f32 to vector<64x128xf32>
    %11 = arith.maximumf %9, %10 : vector<64x128xf32>
    %c0_8 = arith.constant 0 : index
    %c0_9 = arith.constant 0 : index
    %12 = vector.load %arg5[%c0_8, %c0_9] : memref<128x384xf32, #tpu.memory_space<vmem>>, vector<128x384xf32>
    %cst_10 = arith.constant dense<0.000000e+00> : vector<64x384xf32>
    %13 = tpu.matmul %11, %12, %cst_10 {dimension_numbers = #tpu.dot_dimension_numbers<[1], [0], [0], [1], [0, 0, 1, 1], [], []>} : vector<64x128xf32>, vector<128x384xf32>, vector<64x384xf32> -> vector<64x384xf32>
    %c0_11 = arith.constant 0 : index
    %c0_12 = arith.constant 0 : index
    %14 = vector.load %arg6[%c0_11, %c0_12] : memref<1x384xf32, #tpu.memory_space<vmem>>, vector<1x384xf32>
    %15 = vector.broadcast %14 : vector<1x384xf32> to vector<64x384xf32>
    %16 = arith.addf %13, %15 : vector<64x384xf32>
    %c0_13 = arith.constant 0 : index
    %c0_14 = arith.constant 0 : index
    %17 = vector.load %arg17[%c0_13, %c0_14] : memref<64x384xf32, #tpu.memory_space<vmem>>, vector<64x384xf32>
    tpu.vector_store %arg17[%c0_13, %c0_14], %16 {strides = array<i32>} : memref<64x384xf32, #tpu.memory_space<vmem>>, vector<64x384xf32>,
    %c0_15 = arith.constant 0 : index
    %c0_16 = arith.constant 0 : index
    %c0_17 = arith.constant 0 : index
    %18 = vector.load %arg8[%c0_15, %c0_16, %c0_17] : memref<2x1x384xf32, #tpu.memory_space<vmem>>, vector<2x1x384xf32>
    %c0_18 = arith.constant 0 : index
    %c0_19 = arith.constant 0 : index
    %c0_20 = arith.constant 0 : index
    %19 = vector.load %arg10[%c0_18, %c0_19, %c0_20] : memref<1x1x384xf32, #tpu.memory_space<vmem>>, vector<1x1x384xf32>
    %20 = vector.extract_strided_slice %18 {offsets = [0, 0, 0], sizes = [1, 1, 384], strides = [1, 1, 1]} : vector<2x1x384xf32> to vector<1x1x384xf32>
    %21 = vector.shape_cast %20 : vector<1x1x384xf32> to vector<1x384xf32>
    %22 = vector.shape_cast %21 : vector<1x384xf32> to vector<1x384xf32>
    %23 = vector.broadcast %22 : vector<1x384xf32> to vector<8x384xf32>
    %24 = vector.extract_strided_slice %18 {offsets = [1, 0, 0], sizes = [1, 1, 384], strides = [1, 1, 1]} : vector<2x1x384xf32> to vector<1x1x384xf32>
    %25 = vector.shape_cast %24 : vector<1x1x384xf32> to vector<1x384xf32>
    %26 = vector.shape_cast %25 : vector<1x384xf32> to vector<1x384xf32>
    %27 = vector.broadcast %26 : vector<1x384xf32> to vector<8x384xf32>
    %28 = vector.shape_cast %19 : vector<1x1x384xf32> to vector<1x384xf32>
    %29 = vector.shape_cast %28 : vector<1x384xf32> to vector<1x384xf32>
    %30 = vector.broadcast %29 : vector<1x384xf32> to vector<8x384xf32>
    %c0_21 = arith.constant 0 : index
    %c0_22 = arith.constant 0 : index
    %c0_23 = arith.constant 0 : index
    %c0_24 = arith.constant 0 : index
    %31 = vector.load %arg16[%c0_21, %c0_22, %c0_23, %c0_24] : memref<1x2x8x128xf32, #tpu.memory_space<vmem>>, vector<1x1x8x128xf32>
    %32 = vector.shape_cast %31 : vector<1x1x8x128xf32> to vector<8x128xf32>
    %c0_25 = arith.constant 0 : index
    %c1 = arith.constant 1 : index
    %c0_26 = arith.constant 0 : index
    %c0_27 = arith.constant 0 : index
    %33 = vector.load %arg16[%c0_25, %c1, %c0_26, %c0_27] : memref<1x2x8x128xf32, #tpu.memory_space<vmem>>, vector<1x1x8x128xf32>
    %34 = vector.shape_cast %33 : vector<1x1x8x128xf32> to vector<8x128xf32>
    %c0_i32_28 = arith.constant 0 : i32
    %c4_i32 = arith.constant 4 : i32
    %35 = arith.addi %c0_i32_28, %c4_i32 : i32
    %c1_i32 = arith.constant 1 : i32
    %36:2 = scf.for %arg19 = %c0_i32_28 to %35 step %c1_i32 iter_args(%arg20 = %32, %arg21 = %34) -> (vector<8x128xf32>, vector<8x128xf32>)  : i32 {
      %c2_i32 = arith.constant 2 : i32
      %59 = arith.muli %arg19, %c2_i32 : i32
      %c0_i32_54 = arith.constant 0 : i32
      %60 = arith.addi %59, %c0_i32_54 : i32
      %c8_i32 = arith.constant 8 : i32
      %61 = arith.muli %60, %c8_i32 : i32
      %62 = tpu.assume_multiple %61, 8 : i32
      %c0_55 = arith.constant 0 : index
      %c0_56 = arith.constant 0 : index
      %c0_57 = arith.constant 0 : index
      %63 = vector.load %arg7[%c0_55, %c0_56, %c0_57] : memref<2x128x384xf32, #tpu.memory_space<vmem>>, vector<1x128x384xf32>
      %64 = vector.shape_cast %63 : vector<1x128x384xf32> to vector<128x384xf32>
      %cst_58 = arith.constant dense<0.000000e+00> : vector<8x384xf32>
      %65 = tpu.matmul %arg20, %64, %cst_58 {dimension_numbers = #tpu.dot_dimension_numbers<[1], [0], [0], [1], [0, 0, 1, 1], [], []>} : vector<8x128xf32>, vector<128x384xf32>, vector<8x384xf32> -> vector<8x384xf32>
      %66 = arith.addf %65, %23 : vector<8x384xf32>
      %c1_59 = arith.constant 1 : index
      %c0_60 = arith.constant 0 : index
      %c0_61 = arith.constant 0 : index
      %67 = vector.load %arg7[%c1_59, %c0_60, %c0_61] : memref<2x128x384xf32, #tpu.memory_space<vmem>>, vector<1x128x384xf32>
      %68 = vector.shape_cast %67 : vector<1x128x384xf32> to vector<128x384xf32>
      %cst_62 = arith.constant dense<0.000000e+00> : vector<8x384xf32>
      %69 = tpu.matmul %arg21, %68, %cst_62 {dimension_numbers = #tpu.dot_dimension_numbers<[1], [0], [0], [1], [0, 0, 1, 1], [], []>} : vector<8x128xf32>, vector<128x384xf32>, vector<8x384xf32> -> vector<8x384xf32>
      %70 = arith.addf %69, %27 : vector<8x384xf32>
      %71 = arith.index_cast %62 : i32 to index
      %c0_63 = arith.constant 0 : index
      %72 = vector.load %arg17[%71, %c0_63] : memref<64x384xf32, #tpu.memory_space<vmem>>, vector<8x384xf32>
      %73 = vector.extract_strided_slice %72 {offsets = [0, 0], sizes = [8, 128], strides = [1, 1]} : vector<8x384xf32> to vector<8x128xf32>
      %74 = vector.extract_strided_slice %66 {offsets = [0, 0], sizes = [8, 128], strides = [1, 1]} : vector<8x384xf32> to vector<8x128xf32>
      %75 = arith.addf %73, %74 : vector<8x128xf32>
      %76 = arith.negf %75 : vector<8x128xf32>
      %77 = math.exp %76 : vector<8x128xf32>
      %cst_64 = arith.constant 1.000000e+00 : f32
      %78 = vector.broadcast %cst_64 : f32 to vector<8x128xf32>
      %79 = arith.addf %78, %77 : vector<8x128xf32>
      %80 = arith.divf %78, %79 : vector<8x128xf32>
      %81 = vector.extract_strided_slice %72 {offsets = [0, 128], sizes = [8, 128], strides = [1, 1]} : vector<8x384xf32> to vector<8x128xf32>
      %82 = vector.extract_strided_slice %66 {offsets = [0, 128], sizes = [8, 128], strides = [1, 1]} : vector<8x384xf32> to vector<8x128xf32>
      %83 = arith.addf %81, %82 : vector<8x128xf32>
      %84 = arith.negf %83 : vector<8x128xf32>
      %85 = math.exp %84 : vector<8x128xf32>
      %cst_65 = arith.constant 1.000000e+00 : f32
      %86 = vector.broadcast %cst_65 : f32 to vector<8x128xf32>
      %87 = arith.addf %86, %85 : vector<8x128xf32>
      %88 = arith.divf %86, %87 : vector<8x128xf32>
      %89 = vector.extract_strided_slice %72 {offsets = [0, 256], sizes = [8, 128], strides = [1, 1]} : vector<8x384xf32> to vector<8x128xf32>
      %90 = vector.extract_strided_slice %66 {offsets = [0, 256], sizes = [8, 128], strides = [1, 1]} : vector<8x384xf32> to vector<8x128xf32>
      %91 = arith.mulf %80, %90 : vector<8x128xf32>
      %92 = arith.addf %89, %91 : vector<8x128xf32>
      %93 = math.tanh %92 : vector<8x128xf32>
      %cst_66 = arith.constant 1.000000e+00 : f32
      %94 = vector.broadcast %cst_66 : f32 to vector<8x128xf32>
      %95 = arith.subf %94, %88 : vector<8x128xf32>
      %96 = arith.mulf %95, %93 : vector<8x128xf32>
      %97 = arith.mulf %88, %arg20 : vector<8x128xf32>
      %98 = arith.addf %96, %97 : vector<8x128xf32>
      %c0_67 = arith.constant 0 : index
      %c0_68 = arith.constant 0 : index
      %c0_69 = arith.constant 0 : index
      %99 = vector.load %arg9[%c0_67, %c0_68, %c0_69] : memref<1x128x384xf32, #tpu.memory_space<vmem>>, vector<1x128x384xf32>
      %100 = vector.shape_cast %99 : vector<1x128x384xf32> to vector<128x384xf32>
      %cst_70 = arith.constant dense<0.000000e+00> : vector<8x384xf32>
      %101 = tpu.matmul %98, %100, %cst_70 {dimension_numbers = #tpu.dot_dimension_numbers<[1], [0], [0], [1], [0, 0, 1, 1], [], []>} : vector<8x128xf32>, vector<128x384xf32>, vector<8x384xf32> -> vector<8x384xf32>
      %102 = arith.addf %101, %30 : vector<8x384xf32>
      %103 = vector.extract_strided_slice %102 {offsets = [0, 0], sizes = [8, 128], strides = [1, 1]} : vector<8x384xf32> to vector<8x128xf32>
      %104 = vector.extract_strided_slice %70 {offsets = [0, 0], sizes = [8, 128], strides = [1, 1]} : vector<8x384xf32> to vector<8x128xf32>
      %105 = arith.addf %103, %104 : vector<8x128xf32>
      %106 = arith.negf %105 : vector<8x128xf32>
      %107 = math.exp %106 : vector<8x128xf32>
      %cst_71 = arith.constant 1.000000e+00 : f32
      %108 = vector.broadcast %cst_71 : f32 to vector<8x128xf32>
      %109 = arith.addf %108, %107 : vector<8x128xf32>
      %110 = arith.divf %108, %109 : vector<8x128xf32>
      %111 = vector.extract_strided_slice %102 {offsets = [0, 128], sizes = [8, 128], strides = [1, 1]} : vector<8x384xf32> to vector<8x128xf32>
      %112 = vector.extract_strided_slice %70 {offsets = [0, 128], sizes = [8, 128], strides = [1, 1]} : vector<8x384xf32> to vector<8x128xf32>
      %113 = arith.addf %111, %112 : vector<8x128xf32>
      %114 = arith.negf %113 : vector<8x128xf32>
      %115 = math.exp %114 : vector<8x128xf32>
      %cst_72 = arith.constant 1.000000e+00 : f32
      %116 = vector.broadcast %cst_72 : f32 to vector<8x128xf32>
      %117 = arith.addf %116, %115 : vector<8x128xf32>
      %118 = arith.divf %116, %117 : vector<8x128xf32>
      %119 = vector.extract_strided_slice %102 {offsets = [0, 256], sizes = [8, 128], strides = [1, 1]} : vector<8x384xf32> to vector<8x128xf32>
      %120 = vector.extract_strided_slice %70 {offsets = [0, 256], sizes = [8, 128], strides = [1, 1]} : vector<8x384xf32> to vector<8x128xf32>
      %121 = arith.mulf %110, %120 : vector<8x128xf32>
      %122 = arith.addf %119, %121 : vector<8x128xf32>
      %123 = math.tanh %122 : vector<8x128xf32>
      %cst_73 = arith.constant 1.000000e+00 : f32
      %124 = vector.broadcast %cst_73 : f32 to vector<8x128xf32>
      %125 = arith.subf %124, %118 : vector<8x128xf32>
      %126 = arith.mulf %125, %123 : vector<8x128xf32>
      %127 = arith.mulf %118, %arg21 : vector<8x128xf32>
      %128 = arith.addf %126, %127 : vector<8x128xf32>
      %129 = arith.index_cast %62 : i32 to index
      %c0_74 = arith.constant 0 : index
      %130 = vector.load %arg18[%129, %c0_74] : memref<64x128xf32, #tpu.memory_space<vmem>>, vector<8x128xf32>
      tpu.vector_store %arg18[%129, %c0_74], %128 {strides = array<i32>} : memref<64x128xf32, #tpu.memory_space<vmem>>, vector<8x128xf32>,
      %c1_i32_75 = arith.constant 1 : i32
      %131 = arith.addi %59, %c1_i32_75 : i32
      %c8_i32_76 = arith.constant 8 : i32
      %132 = arith.muli %131, %c8_i32_76 : i32
      %133 = tpu.assume_multiple %132, 8 : i32
      %c0_77 = arith.constant 0 : index
      %c0_78 = arith.constant 0 : index
      %c0_79 = arith.constant 0 : index
      %134 = vector.load %arg7[%c0_77, %c0_78, %c0_79] : memref<2x128x384xf32, #tpu.memory_space<vmem>>, vector<1x128x384xf32>
      %135 = vector.shape_cast %134 : vector<1x128x384xf32> to vector<128x384xf32>
      %cst_80 = arith.constant dense<0.000000e+00> : vector<8x384xf32>
      %136 = tpu.matmul %98, %135, %cst_80 {dimension_numbers = #tpu.dot_dimension_numbers<[1], [0], [0], [1], [0, 0, 1, 1], [], []>} : vector<8x128xf32>, vector<128x384xf32>, vector<8x384xf32> -> vector<8x384xf32>
      %137 = arith.addf %136, %23 : vector<8x384xf32>
      %c1_81 = arith.constant 1 : index
      %c0_82 = arith.constant 0 : index
      %c0_83 = arith.constant 0 : index
      %138 = vector.load %arg7[%c1_81, %c0_82, %c0_83] : memref<2x128x384xf32, #tpu.memory_space<vmem>>, vector<1x128x384xf32>
      %139 = vector.shape_cast %138 : vector<1x128x384xf32> to vector<128x384xf32>
      %cst_84 = arith.constant dense<0.000000e+00> : vector<8x384xf32>
      %140 = tpu.matmul %128, %139, %cst_84 {dimension_numbers = #tpu.dot_dimension_numbers<[1], [0], [0], [1], [0, 0, 1, 1], [], []>} : vector<8x128xf32>, vector<128x384xf32>, vector<8x384xf32> -> vector<8x384xf32>
      %141 = arith.addf %140, %27 : vector<8x384xf32>
      %142 = arith.index_cast %133 : i32 to index
      %c0_85 = arith.constant 0 : index
      %143 = vector.load %arg17[%142, %c0_85] : memref<64x384xf32, #tpu.memory_space<vmem>>, vector<8x384xf32>
      %144 = vector.extract_strided_slice %143 {offsets = [0, 0], sizes = [8, 128], strides = [1, 1]} : vector<8x384xf32> to vector<8x128xf32>
      %145 = vector.extract_strided_slice %137 {offsets = [0, 0], sizes = [8, 128], strides = [1, 1]} : vector<8x384xf32> to vector<8x128xf32>
      %146 = arith.addf %144, %145 : vector<8x128xf32>
      %147 = arith.negf %146 : vector<8x128xf32>
      %148 = math.exp %147 : vector<8x128xf32>
      %cst_86 = arith.constant 1.000000e+00 : f32
      %149 = vector.broadcast %cst_86 : f32 to vector<8x128xf32>
      %150 = arith.addf %149, %148 : vector<8x128xf32>
      %151 = arith.divf %149, %150 : vector<8x128xf32>
      %152 = vector.extract_strided_slice %143 {offsets = [0, 128], sizes = [8, 128], strides = [1, 1]} : vector<8x384xf32> to vector<8x128xf32>
      %153 = vector.extract_strided_slice %137 {offsets = [0, 128], sizes = [8, 128], strides = [1, 1]} : vector<8x384xf32> to vector<8x128xf32>
      %154 = arith.addf %152, %153 : vector<8x128xf32>
      %155 = arith.negf %154 : vector<8x128xf32>
      %156 = math.exp %155 : vector<8x128xf32>
      %cst_87 = arith.constant 1.000000e+00 : f32
      %157 = vector.broadcast %cst_87 : f32 to vector<8x128xf32>
      %158 = arith.addf %157, %156 : vector<8x128xf32>
      %159 = arith.divf %157, %158 : vector<8x128xf32>
      %160 = vector.extract_strided_slice %143 {offsets = [0, 256], sizes = [8, 128], strides = [1, 1]} : vector<8x384xf32> to vector<8x128xf32>
      %161 = vector.extract_strided_slice %137 {offsets = [0, 256], sizes = [8, 128], strides = [1, 1]} : vector<8x384xf32> to vector<8x128xf32>
      %162 = arith.mulf %151, %161 : vector<8x128xf32>
      %163 = arith.addf %160, %162 : vector<8x128xf32>
      %164 = math.tanh %163 : vector<8x128xf32>
      %cst_88 = arith.constant 1.000000e+00 : f32
      %165 = vector.broadcast %cst_88 : f32 to vector<8x128xf32>
      %166 = arith.subf %165, %159 : vector<8x128xf32>
      %167 = arith.mulf %166, %164 : vector<8x128xf32>
      %168 = arith.mulf %159, %98 : vector<8x128xf32>
      %169 = arith.addf %167, %168 : vector<8x128xf32>
      %c0_89 = arith.constant 0 : index
      %c0_90 = arith.constant 0 : index
      %c0_91 = arith.constant 0 : index
      %170 = vector.load %arg9[%c0_89, %c0_90, %c0_91] : memref<1x128x384xf32, #tpu.memory_space<vmem>>, vector<1x128x384xf32>
      %171 = vector.shape_cast %170 : vector<1x128x384xf32> to vector<128x384xf32>
      %cst_92 = arith.constant dense<0.000000e+00> : vector<8x384xf32>
      %172 = tpu.matmul %169, %171, %cst_92 {dimension_numbers = #tpu.dot_dimension_numbers<[1], [0], [0], [1], [0, 0, 1, 1], [], []>} : vector<8x128xf32>, vector<128x384xf32>, vector<8x384xf32> -> vector<8x384xf32>
      %173 = arith.addf %172, %30 : vector<8x384xf32>
      %174 = vector.extract_strided_slice %173 {offsets = [0, 0], sizes = [8, 128], strides = [1, 1]} : vector<8x384xf32> to vector<8x128xf32>
      %175 = vector.extract_strided_slice %141 {offsets = [0, 0], sizes = [8, 128], strides = [1, 1]} : vector<8x384xf32> to vector<8x128xf32>
      %176 = arith.addf %174, %175 : vector<8x128xf32>
      %177 = arith.negf %176 : vector<8x128xf32>
      %178 = math.exp %177 : vector<8x128xf32>
      %cst_93 = arith.constant 1.000000e+00 : f32
      %179 = vector.broadcast %cst_93 : f32 to vector<8x128xf32>
      %180 = arith.addf %179, %178 : vector<8x128xf32>
      %181 = arith.divf %179, %180 : vector<8x128xf32>
      %182 = vector.extract_strided_slice %173 {offsets = [0, 128], sizes = [8, 128], strides = [1, 1]} : vector<8x384xf32> to vector<8x128xf32>
      %183 = vector.extract_strided_slice %141 {offsets = [0, 128], sizes = [8, 128], strides = [1, 1]} : vector<8x384xf32> to vector<8x128xf32>
      %184 = arith.addf %182, %183 : vector<8x128xf32>
      %185 = arith.negf %184 : vector<8x128xf32>
      %186 = math.exp %185 : vector<8x128xf32>
      %cst_94 = arith.constant 1.000000e+00 : f32
      %187 = vector.broadcast %cst_94 : f32 to vector<8x128xf32>
      %188 = arith.addf %187, %186 : vector<8x128xf32>
      %189 = arith.divf %187, %188 : vector<8x128xf32>
      %190 = vector.extract_strided_slice %173 {offsets = [0, 256], sizes = [8, 128], strides = [1, 1]} : vector<8x384xf32> to vector<8x128xf32>
      %191 = vector.extract_strided_slice %141 {offsets = [0, 256], sizes = [8, 128], strides = [1, 1]} : vector<8x384xf32> to vector<8x128xf32>
      %192 = arith.mulf %181, %191 : vector<8x128xf32>
      %193 = arith.addf %190, %192 : vector<8x128xf32>
      %194 = math.tanh %193 : vector<8x128xf32>
      %cst_95 = arith.constant 1.000000e+00 : f32
      %195 = vector.broadcast %cst_95 : f32 to vector<8x128xf32>
      %196 = arith.subf %195, %189 : vector<8x128xf32>
      %197 = arith.mulf %196, %194 : vector<8x128xf32>
      %198 = arith.mulf %189, %128 : vector<8x128xf32>
      %199 = arith.addf %197, %198 : vector<8x128xf32>
      %200 = arith.index_cast %133 : i32 to index
      %c0_96 = arith.constant 0 : index
      %201 = vector.load %arg18[%200, %c0_96] : memref<64x128xf32, #tpu.memory_space<vmem>>, vector<8x128xf32>
      tpu.vector_store %arg18[%200, %c0_96], %199 {strides = array<i32>} : memref<64x128xf32, #tpu.memory_space<vmem>>, vector<8x128xf32>,
      scf.yield %169, %199 : vector<8x128xf32>, vector<8x128xf32>
    }
    %c4_i32_29 = arith.constant 4 : i32
    %c0_30 = arith.constant 0 : index
    %c0_31 = arith.constant 0 : index
    %c0_32 = arith.constant 0 : index
    %c0_33 = arith.constant 0 : index
    %37 = vector.load %arg16[%c0_30, %c0_31, %c0_32, %c0_33] : memref<1x2x8x128xf32, #tpu.memory_space<vmem>>, vector<1x1x8x128xf32>
    %38 = vector.shape_cast %37 : vector<1x1x8x128xf32> to vector<8x128xf32>
    %39 = vector.shape_cast %36#0 : vector<8x128xf32> to vector<1x1x8x128xf32>
    tpu.vector_store %arg16[%c0_30, %c0_31, %c0_32, %c0_33], %39 {strides = array<i32>} : memref<1x2x8x128xf32, #tpu.memory_space<vmem>>, vector<1x1x8x128xf32>,
    %c0_34 = arith.constant 0 : index
    %c1_35 = arith.constant 1 : index
    %c0_36 = arith.constant 0 : index
    %c0_37 = arith.constant 0 : index
    %40 = vector.load %arg16[%c0_34, %c1_35, %c0_36, %c0_37] : memref<1x2x8x128xf32, #tpu.memory_space<vmem>>, vector<1x1x8x128xf32>
    %41 = vector.shape_cast %40 : vector<1x1x8x128xf32> to vector<8x128xf32>
    %42 = vector.shape_cast %36#1 : vector<8x128xf32> to vector<1x1x8x128xf32>
    tpu.vector_store %arg16[%c0_34, %c1_35, %c0_36, %c0_37], %42 {strides = array<i32>} : memref<1x2x8x128xf32, #tpu.memory_space<vmem>>, vector<1x1x8x128xf32>,
    %c0_38 = arith.constant 0 : index
    %c0_39 = arith.constant 0 : index
    %43 = vector.load %arg18[%c0_38, %c0_39] : memref<64x128xf32, #tpu.memory_space<vmem>>, vector<64x128xf32>
    %c0_40 = arith.constant 0 : index
    %c0_41 = arith.constant 0 : index
    %44 = vector.load %arg11[%c0_40, %c0_41] : memref<128x128xf32, #tpu.memory_space<vmem>>, vector<128x128xf32>
    %cst_42 = arith.constant dense<0.000000e+00> : vector<64x128xf32>
    %45 = tpu.matmul %43, %44, %cst_42 {dimension_numbers = #tpu.dot_dimension_numbers<[1], [0], [0], [1], [0, 0, 1, 1], [], []>} : vector<64x128xf32>, vector<128x128xf32>, vector<64x128xf32> -> vector<64x128xf32>
    %c0_43 = arith.constant 0 : index
    %c0_44 = arith.constant 0 : index
    %46 = vector.load %arg12[%c0_43, %c0_44] : memref<1x128xf32, #tpu.memory_space<vmem>>, vector<1x128xf32>
    %47 = vector.broadcast %46 : vector<1x128xf32> to vector<64x128xf32>
    %48 = arith.addf %45, %47 : vector<64x128xf32>
    %cst_45 = arith.constant 0.000000e+00 : f32
    %49 = vector.broadcast %cst_45 : f32 to vector<64x128xf32>
    %50 = arith.maximumf %48, %49 : vector<64x128xf32>
    %c0_46 = arith.constant 0 : index
    %c0_47 = arith.constant 0 : index
    %51 = vector.load %arg13[%c0_46, %c0_47] : memref<128x128xf32, #tpu.memory_space<vmem>>, vector<128x128xf32>
    %cst_48 = arith.constant dense<0.000000e+00> : vector<64x128xf32>
    %52 = tpu.matmul %50, %51, %cst_48 {dimension_numbers = #tpu.dot_dimension_numbers<[1], [0], [0], [1], [0, 0, 1, 1], [], []>} : vector<64x128xf32>, vector<128x128xf32>, vector<64x128xf32> -> vector<64x128xf32>
    %c0_49 = arith.constant 0 : index
    %c0_50 = arith.constant 0 : index
    %53 = vector.load %arg14[%c0_49, %c0_50] : memref<1x128xf32, #tpu.memory_space<vmem>>, vector<1x128xf32>
    %54 = vector.broadcast %53 : vector<1x128xf32> to vector<64x128xf32>
    %55 = arith.addf %52, %54 : vector<64x128xf32>
    %c0_51 = arith.constant 0 : index
    %c0_52 = arith.constant 0 : index
    %c0_53 = arith.constant 0 : index
    %56 = vector.load %arg15[%c0_51, %c0_52, %c0_53] : memref<1x64x128xf32, #tpu.memory_space<vmem>>, vector<1x64x128xf32>
    %57 = vector.shape_cast %56 : vector<1x64x128xf32> to vector<64x128xf32>
    %58 = vector.shape_cast %55 : vector<64x128xf32> to vector<1x64x128xf32>
    tpu.vector_store %arg15[%c0_51, %c0_52, %c0_53], %58 {strides = array<i32>} : memref<1x64x128xf32, #tpu.memory_space<vmem>>, vector<1x64x128xf32>,
    return
  }
  func.func @transform_0(%arg0: i32, %arg1: i32) -> (i32, i32, i32) {
    %c0_i32 = arith.constant 0 : i32
    %c0_i32_0 = arith.constant 0 : i32
    return %arg0, %arg1, %c0_i32 : i32, i32, i32
  }
  func.func @transform_1(%arg0: i32, %arg1: i32) -> (i32, i32) {
    %c0_i32 = arith.constant 0 : i32
    %c0_i32_0 = arith.constant 0 : i32
    %c0_i32_1 = arith.constant 0 : i32
    return %c0_i32, %c0_i32_0 : i32, i32
  }
  func.func @transform_2(%arg0: i32, %arg1: i32) -> (i32, i32) {
    %c0_i32 = arith.constant 0 : i32
    %c0_i32_0 = arith.constant 0 : i32
    %c0_i32_1 = arith.constant 0 : i32
    return %c0_i32, %c0_i32_0 : i32, i32
  }
  func.func @transform_3(%arg0: i32, %arg1: i32) -> (i32, i32) {
    %c0_i32 = arith.constant 0 : i32
    %c0_i32_0 = arith.constant 0 : i32
    %c0_i32_1 = arith.constant 0 : i32
    return %c0_i32, %c0_i32_0 : i32, i32
  }
  func.func @transform_4(%arg0: i32, %arg1: i32) -> (i32, i32) {
    %c0_i32 = arith.constant 0 : i32
    %c0_i32_0 = arith.constant 0 : i32
    %c0_i32_1 = arith.constant 0 : i32
    return %c0_i32, %c0_i32_0 : i32, i32
  }
  func.func @transform_5(%arg0: i32, %arg1: i32) -> (i32, i32, i32) {
    %c0_i32 = arith.constant 0 : i32
    %c0_i32_0 = arith.constant 0 : i32
    %c0_i32_1 = arith.constant 0 : i32
    %c0_i32_2 = arith.constant 0 : i32
    return %c0_i32, %c0_i32_0, %c0_i32_1 : i32, i32, i32
  }
  func.func @transform_6(%arg0: i32, %arg1: i32) -> (i32, i32, i32) {
    %c0_i32 = arith.constant 0 : i32
    %c0_i32_0 = arith.constant 0 : i32
    %c0_i32_1 = arith.constant 0 : i32
    %c0_i32_2 = arith.constant 0 : i32
    return %c0_i32, %c0_i32_0, %c0_i32_1 : i32, i32, i32
  }
  func.func @transform_7(%arg0: i32, %arg1: i32) -> (i32, i32, i32) {
    %c0_i32 = arith.constant 0 : i32
    %c0_i32_0 = arith.constant 0 : i32
    %c0_i32_1 = arith.constant 0 : i32
    %c0_i32_2 = arith.constant 0 : i32
    return %c0_i32, %c0_i32_0, %c0_i32_1 : i32, i32, i32
  }
  func.func @transform_8(%arg0: i32, %arg1: i32) -> (i32, i32, i32) {
    %c0_i32 = arith.constant 0 : i32
    %c0_i32_0 = arith.constant 0 : i32
    %c0_i32_1 = arith.constant 0 : i32
    %c0_i32_2 = arith.constant 0 : i32
    return %c0_i32, %c0_i32_0, %c0_i32_1 : i32, i32, i32
  }
  func.func @transform_9(%arg0: i32, %arg1: i32) -> (i32, i32) {
    %c0_i32 = arith.constant 0 : i32
    %c0_i32_0 = arith.constant 0 : i32
    %c0_i32_1 = arith.constant 0 : i32
    return %c0_i32, %c0_i32_0 : i32, i32
  }
  func.func @transform_10(%arg0: i32, %arg1: i32) -> (i32, i32) {
    %c0_i32 = arith.constant 0 : i32
    %c0_i32_0 = arith.constant 0 : i32
    %c0_i32_1 = arith.constant 0 : i32
    return %c0_i32, %c0_i32_0 : i32, i32
  }
  func.func @transform_11(%arg0: i32, %arg1: i32) -> (i32, i32) {
    %c0_i32 = arith.constant 0 : i32
    %c0_i32_0 = arith.constant 0 : i32
    %c0_i32_1 = arith.constant 0 : i32
    return %c0_i32, %c0_i32_0 : i32, i32
  }
  func.func @transform_12(%arg0: i32, %arg1: i32) -> (i32, i32) {
    %c0_i32 = arith.constant 0 : i32
    %c0_i32_0 = arith.constant 0 : i32
    %c0_i32_1 = arith.constant 0 : i32
    return %c0_i32, %c0_i32_0 : i32, i32
  }
  func.func @transform_13(%arg0: i32, %arg1: i32) -> (i32, i32, i32) {
    %c0_i32 = arith.constant 0 : i32
    %c0_i32_0 = arith.constant 0 : i32
    return %arg0, %arg1, %c0_i32 : i32, i32, i32
  }
  func.func @transform_14(%arg0: i32, %arg1: i32) -> (i32, i32, i32, i32) {
    %c0_i32 = arith.constant 0 : i32
    %c0_i32_0 = arith.constant 0 : i32
    %c0_i32_1 = arith.constant 0 : i32
    %c0_i32_2 = arith.constant 0 : i32
    return %arg0, %c0_i32, %c0_i32_0, %c0_i32_1 : i32, i32, i32, i32
  }
}

</mosaic_0001>

<bundles_post_ra>
// kernel: _lambda_.1
= control target key start
LH: loop header
LB: loop body
LE: loop exit
PB: predicated region body
PF: predicated region fallthrough
CT: control target
= control target key end

     0   :  { %20 = vsyncpa [#allocation5], 0  ;;  %s4534_s0 = inlined_call_operand.vmem [shape: f32[1,64,16], index: 0, kind: input, shape index: {}]   ;;  %s4535_s1 = inlined_call_operand.hbm [shape: f32[16,128], index: 1, kind: input, shape index: {}]   ;;  %s4536_s2 = inlined_call_operand.vmem [shape: f32[1,128], index: 2, kind: input, shape index: {}]   ;;  %s4537_s3 = inlined_call_operand.hbm [shape: f32[128,384], index: 3, kind: input, shape index: {}]   ;;  %s4538_s4 = inlined_call_operand.hbm [shape: f32[1,384], index: 4, kind: input, shape index: {}]   ;;  %s4539_s5 = inlined_call_operand.hbm [shape: f32[2,128,384], index: 5, kind: input, shape index: {}]   ;;  %s4540_s6 = inlined_call_operand.hbm [shape: f32[2,1,384], index: 6, kind: input, shape index: {}]   ;;  %s4541_s7 = inlined_call_operand.hbm [shape: f32[1,128,384], index: 7, kind: input, shape index: {}]   ;;  %s4542_s8 = inlined_call_operand.hbm [shape: f32[1,1,384], index: 8, kind: input, shape index: {}]   ;;  %s4543_s9 = inlined_call_operand.vmem [shape: f32[128,128], index: 9, kind: input, shape index: {}]   ;;  %s4544_s10 = inlined_call_operand.hbm [shape: f32[1,128], index: 10, kind: input, shape index: {}]   ;;  %s4545_s11 = inlined_call_operand.vmem [shape: f32[128,128], index: 11, kind: input, shape index: {}]   ;;  %s4546_s12 = inlined_call_operand.hbm [shape: f32[1,128], index: 12, kind: input, shape index: {}]   ;;  %s4547_s13 = inlined_call_operand.vmem [shape: f32[1,64,128], index: 13, kind: output, shape index: {0}]   ;;  %s4548_s14 = inlined_call_operand.hbm [shape: f32[1,2,8,128], index: 14, kind: output, shape index: {1}]  }
   0x1   :  { %21 = vsyncpa [#allocation8], 0 }
   0x2   :  { %22 = vsyncpa [#allocation11], 0 }
   0x3   :  { %23 = vsyncpa [#allocation14], 0 }
   0x4   :  { %24 = vsyncpa [#allocation17], 0 }
   0x5   :  { %25 = vsyncpa [#allocation6], 0  ;;  %s3657_s29 = smov [#allocation7]   ;;  %s3401_s17 = scalar_lea.hbm %s4537_s3, 6144 }
   0x6   :  { %s47_s30 = sshll.u32 %s3657_s29, 4  ;;  %p3402_p0 = scmp.ne.s32.totalorder %s4537_s3, %s3401_s17  ;;  %s48_s30 = int_to_ptr.vmem [resolvable:$true] %s47_s30 }
   0x7   :  { %p3405_p1 = scmp.lt.u32.totalorder %s3401_s17, %s4537_s3 }
   0x9   :  { %p3407_p2 = pnand %p3405_p1, %p3402_p0 }
   0xb   :  { %3410 = shalt.err (!%p3407_p2)
}
   0xc   :  { %s3411_s22 = scalar_lea.vmem %s48_s30, 6144  ;;  %p3416_p4 = scmp.lt.s32.totalorder %s48_s30, %s48_s30 }
   0xd   :  { %p3412_p3 = scmp.ne.s32.totalorder %s48_s30, %s3411_s22  ;;  %p3417_p5 = scmp.lt.s32.totalorder %s3411_s22, %s3411_s22 }
   0xf   :  { %p3418_p6 = por %p3417_p5, %p3416_p4 }
  0x11   :  { %p3419_p7 = pnand %p3418_p6, %p3412_p3 }
  0x13   :  { %3422 = shalt.err (!%p3419_p7)
}
  0x14   :  { %s3658_s23 = smov 384   ;;  %s3659_s24 = smov 24  }
  0x15   :  { %53 = dma.hbm_to_vmem [thread:$0]  %s4537_s3, 6144, %s48_s30, [#allocation8], %s3658_s23, %s3658_s23, %s3659_s24  }
  0x16   :  { %s3660_s27 = smov [#allocation10]   ;;  %s3661_s29 = smov [#allocation13]  }
  0x17   :  { %s69_s28 = sshll.u32 %s3660_s27, 4  ;;  %s93_s15 = sshll.u32 %s3661_s29, 4  ;;  %s70_s28 = int_to_ptr.vmem [resolvable:$true] %s69_s28  ;;  %s94_s15 = int_to_ptr.vmem [resolvable:$true] %s93_s15 }
  0x18   :  { %s3423_s18 = scalar_lea.hbm %s4539_s5, 12288 }
  0x19   :  { %p3424_p8 = scmp.ne.s32.totalorder %s4539_s5, %s3423_s18  ;;  %p3427_p9 = scmp.lt.u32.totalorder %s3423_s18, %s4539_s5 }
  0x1b   :  { %p3429_p10 = pnand %p3427_p9, %p3424_p8 }
  0x1d   :  { %3432 = shalt.err (!%p3429_p10)
}
  0x1e   :  { %s3433_s3 = scalar_lea.vmem %s70_s28, 12288  ;;  %p3438_p12 = scmp.lt.s32.totalorder %s70_s28, %s70_s28 }
  0x1f   :  { %p3434_p11 = scmp.ne.s32.totalorder %s70_s28, %s3433_s3  ;;  %p3439_p13 = scmp.lt.s32.totalorder %s3433_s3, %s3433_s3 }
  0x21   :  { %p3440_p0 = por %p3439_p13, %p3438_p12 }
  0x23   :  { %p3441_p1 = pnand %p3440_p0, %p3434_p11 }
  0x25   :  { %3444 = shalt.err (!%p3441_p1)
}
  0x26   :  { %75 = dma.hbm_to_vmem [thread:$0]  %s4539_s5, 12288, %s70_s28, [#allocation11], %s3658_s23, %s3658_s23, %s3659_s24  }
  0x27   :  { %s3445_s29 = scalar_lea.hbm %s4541_s7, 6144 }
  0x28   :  { %p3446_p2 = scmp.ne.s32.totalorder %s4541_s7, %s3445_s29  ;;  %p3449_p3 = scmp.lt.u32.totalorder %s3445_s29, %s4541_s7 }
  0x2a   :  { %p3451_p4 = pnand %p3449_p3, %p3446_p2 }
  0x2c   :  { %3454 = shalt.err (!%p3451_p4)
}
  0x2d   :  { %s3455_s20 = scalar_lea.vmem %s94_s15, 6144  ;;  %p3460_p6 = scmp.lt.s32.totalorder %s94_s15, %s94_s15 }
  0x2e   :  { %p3456_p5 = scmp.ne.s32.totalorder %s94_s15, %s3455_s20  ;;  %p3461_p7 = scmp.lt.s32.totalorder %s3455_s20, %s3455_s20 }
  0x30   :  { %p3462_p8 = por %p3461_p7, %p3460_p6 }
  0x32   :  { %p3463_p9 = pnand %p3462_p8, %p3456_p5 }
  0x34   :  { %3466 = shalt.err (!%p3463_p9)
}
  0x35   :  { %99 = dma.hbm_to_vmem [thread:$0]  %s4541_s7, 6144, %s94_s15, [#allocation14], %s3658_s23, %s3658_s23, %s3659_s24  }
  0x36   :  { %s3662_s21 = smov [#allocation16]   ;;  %s3663_s3 = smov [#allocation4]  }
  0x37   :  { %s118_s22 = sshll.u32 %s3662_s21, 4  ;;  %s33_s30 = sshll.u32 %s3663_s3, 4  ;;  %s119_s22 = int_to_ptr.vmem [resolvable:$true] %s118_s22  ;;  %s34_s30 = int_to_ptr.vmem [resolvable:$true] %s33_s30 }
  0x38   :  { %s3467_s27 = scalar_lea.hbm %s4544_s10, 16 }
  0x39   :  { %p3468_p10 = scmp.ne.s32.totalorder %s4544_s10, %s3467_s27  ;;  %p3471_p11 = scmp.lt.u32.totalorder %s3467_s27, %s4544_s10 }
  0x3b   :  { %p3473_p12 = pnand %p3471_p11, %p3468_p10 }
  0x3d   :  { %3476 = shalt.err (!%p3473_p12)
}
  0x3e   :  { %s3477_s7 = scalar_lea.vmem %s119_s22, 16  ;;  %s3481_s23 = scalar_lea.vmem %s119_s22, 32 }
  0x3f   :  { %p3478_p13 = scmp.ne.s32.totalorder %s119_s22, %s3477_s7  ;;  %p3482_p0 = scmp.lt.s32.totalorder %s119_s22, %s119_s22 }
  0x40   :  { %p3483_p1 = scmp.lt.s32.totalorder %s3481_s23, %s3477_s7 }
  0x42   :  { %p3484_p2 = por %p3483_p1, %p3482_p0 }
  0x44   :  { %p3485_p3 = pnand %p3484_p2, %p3478_p13 }
  0x46   :  { %3488 = shalt.err (!%p3485_p3)
}
  0x47   :  { %121 = dma.hbm_to_vmem [thread:$0]  %s4544_s10, 16, %s119_s22, [#allocation17]  }
  0x48   :  { %s3489_s5 = scalar_lea.hbm %s4535_s1, 256 }
  0x49   :  { %p3490_p4 = scmp.ne.s32.totalorder %s4535_s1, %s3489_s5  ;;  %p3493_p5 = scmp.lt.u32.totalorder %s3489_s5, %s4535_s1 }
  0x4b   :  { %p3495_p6 = pnand %p3493_p5, %p3490_p4 }
  0x4d   :  { %3498 = shalt.err (!%p3495_p6)
}
  0x4e   :  { %s3499_s26 = scalar_lea.vmem %s34_s30, 256  ;;  %p3504_p8 = scmp.lt.s32.totalorder %s34_s30, %s34_s30 }
  0x4f   :  { %p3500_p7 = scmp.ne.s32.totalorder %s34_s30, %s3499_s26  ;;  %p3505_p9 = scmp.lt.s32.totalorder %s3499_s26, %s3499_s26 }
  0x51   :  { %p3506_p10 = por %p3505_p9, %p3504_p8 }
  0x53   :  { %p3507_p11 = pnand %p3506_p10, %p3500_p7 }
  0x55   :  { %3510 = shalt.err (!%p3507_p11)
}
  0x56   :  { %s3664_s10 = smov 128   ;;  %s3665_s22 = smov 8  }
  0x57   :  { %39 = dma.hbm_to_vmem [thread:$0]  %s4535_s1, 256, %s34_s30, [#allocation5], %s3664_s10, %s3664_s10, %s3665_s22  }
  0x58   :  { %s3666_s16 = smov [#allocation9]   ;;  %s3667_s18 = smov [#allocation12]  }
  0x59   :  { %s60_s17 = sshll.u32 %s3666_s16, 4  ;;  %s81_s7 = sshll.u32 %s3667_s18, 4  ;;  %s61_s17 = int_to_ptr.vmem [resolvable:$true] %s60_s17  ;;  %s82_s7 = int_to_ptr.vmem [resolvable:$true] %s81_s7 }
  0x5a   :  { %s3511_s15 = scalar_lea.hbm %s4538_s4, 48 }
  0x5b   :  { %p3512_p12 = scmp.ne.s32.totalorder %s4538_s4, %s3511_s15  ;;  %p3515_p13 = scmp.lt.u32.totalorder %s3511_s15, %s4538_s4 }
  0x5d   :  { %p3517_p0 = pnand %p3515_p13, %p3512_p12 }
  0x5f   :  { %3520 = shalt.err (!%p3517_p0)
}
  0x60   :  { %s3521_s1 = scalar_lea.vmem %s61_s17, 48  ;;  %s3525_s30 = scalar_lea.vmem %s61_s17, 64 }
  0x61   :  { %p3522_p1 = scmp.ne.s32.totalorder %s61_s17, %s3521_s1  ;;  %p3526_p2 = scmp.lt.s32.totalorder %s61_s17, %s61_s17 }
  0x62   :  { %p3527_p3 = scmp.lt.s32.totalorder %s3525_s30, %s3521_s1 }
  0x64   :  { %p3528_p4 = por %p3527_p3, %p3526_p2 }
  0x66   :  { %p3529_p5 = pnand %p3528_p4, %p3522_p1 }
  0x68   :  { %3532 = shalt.err (!%p3529_p5)
}
  0x69   :  { %63 = dma.hbm_to_vmem [thread:$0]  %s4538_s4, 48, %s61_s17, [#allocation8]  }
  0x6a   :  { %s3533_s27 = scalar_lea.hbm %s4540_s6, 96 }
  0x6b   :  { %p3534_p6 = scmp.ne.s32.totalorder %s4540_s6, %s3533_s27  ;;  %p3537_p7 = scmp.lt.u32.totalorder %s3533_s27, %s4540_s6 }
  0x6d   :  { %p3539_p8 = pnand %p3537_p7, %p3534_p6 }
  0x6f   :  { %3542 = shalt.err (!%p3539_p8)
}
  0x70   :  { %s3543_s24 = scalar_lea.vmem %s82_s7, 96  ;;  %p3548_p10 = scmp.lt.s32.totalorder %s82_s7, %s82_s7 }
  0x71   :  { %p3544_p9 = scmp.ne.s32.totalorder %s82_s7, %s3543_s24  ;;  %p3549_p11 = scmp.lt.s32.totalorder %s3543_s24, %s3543_s24 }
  0x73   :  { %p3550_p12 = por %p3549_p11, %p3548_p10 }
  0x75   :  { %p3551_p13 = pnand %p3550_p12, %p3544_p9 }
  0x77   :  { %3554 = shalt.err (!%p3551_p13)
}
  0x78   :  { %s3668_s4 = smov 48   ;;  %s3669_s17 = smov 3  }
  0x79   :  { %87 = dma.hbm_to_vmem [thread:$0]  %s4540_s6, 96, %s82_s7, [#allocation11], %s3668_s4, %s3668_s4, %s3669_s17  }
  0x7a   :  { %s3670_s20 = smov [#allocation15]   ;;  %s3671_s28 = smov [#allocation18]  }
  0x7b   :  { %s106_s5 = sshll.u32 %s3670_s20, 4  ;;  %s130_s1 = sshll.u32 %s3671_s28, 4  ;;  %s107_s5 = int_to_ptr.vmem [resolvable:$true] %s106_s5  ;;  %s131_s1 = int_to_ptr.vmem [resolvable:$true] %s130_s1 }
  0x7c   :  { %s3555_s3 = scalar_lea.hbm %s4542_s8, 48 }
  0x7d   :  { %p3556_p0 = scmp.ne.s32.totalorder %s4542_s8, %s3555_s3  ;;  %p3559_p1 = scmp.lt.u32.totalorder %s3555_s3, %s4542_s8 }
  0x7f   :  { %p3561_p2 = pnand %p3559_p1, %p3556_p0 }
  0x81   :  { %3564 = shalt.err (!%p3561_p2)
}
  0x82   :  { %s3565_s6 = scalar_lea.vmem %s107_s5, 48  ;;  %s3569_s7 = scalar_lea.vmem %s107_s5, 64 }
  0x83   :  { %p3566_p3 = scmp.ne.s32.totalorder %s107_s5, %s3565_s6  ;;  %p3570_p4 = scmp.lt.s32.totalorder %s107_s5, %s107_s5 }
  0x84   :  { %p3571_p5 = scmp.lt.s32.totalorder %s3569_s7, %s3565_s6 }
  0x86   :  { %p3572_p6 = por %p3571_p5, %p3570_p4 }
  0x88   :  { %p3573_p7 = pnand %p3572_p6, %p3566_p3 }
  0x8a   :  { %3576 = shalt.err (!%p3573_p7)
}
  0x8b   :  { %109 = dma.hbm_to_vmem [thread:$0]  %s4542_s8, 48, %s107_s5, [#allocation14]  }
  0x8c   :  { %s3577_s4 = scalar_lea.hbm %s4546_s12, 16 }
  0x8d   :  { %p3578_p8 = scmp.ne.s32.totalorder %s4546_s12, %s3577_s4  ;;  %p3581_p9 = scmp.lt.u32.totalorder %s3577_s4, %s4546_s12 }
  0x8f   :  { %p3583_p10 = pnand %p3581_p9, %p3578_p8 }
  0x91   :  { %3586 = shalt.err (!%p3583_p10)
}
  0x92   :  { %s3587_s28 = scalar_lea.vmem %s131_s1, 16  ;;  %s3591_s30 = scalar_lea.vmem %s131_s1, 32 }
  0x93   :  { %p3588_p11 = scmp.ne.s32.totalorder %s131_s1, %s3587_s28  ;;  %p3592_p12 = scmp.lt.s32.totalorder %s131_s1, %s131_s1 }
  0x94   :  { %p3593_p13 = scmp.lt.s32.totalorder %s3591_s30, %s3587_s28 }
  0x96   :  { %p3594_p0 = por %p3593_p13, %p3592_p12 }
  0x98   :  { %p3595_p1 = pnand %p3594_p0, %p3588_p11 }
  0x9a   :  { %3598 = shalt.err (!%p3595_p1)
}
  0x9b   :  { %133 = dma.hbm_to_vmem [thread:$0]  %s4546_s12, 16, %s131_s1, [#allocation17]  }
  0x9c   :  { %3633 = dma.done.wait [#allocation5], 256  }
  0x9d   :  { %3634 = vsyncadd [#allocation5], 4294967040 }
  0x9e   :  { %3635 = dma.done.wait [#allocation8], 6192  }
  0x9f   :  { %3636 = vsyncadd [#allocation8], 4294961104 }
  0xa0   :  { %3637 = dma.done.wait [#allocation11], 12384  }
  0xa1   :  { %3638 = vsyncadd [#allocation11], 4294954912 }
  0xa2   :  { %3639 = dma.done.wait [#allocation14], 6192  }
  0xa3   :  { %3640 = vsyncadd [#allocation14], 4294961104 }
  0xa4   :  { %3641 = dma.done.wait [#allocation17], 32  }
  0xa5   :  { %3642 = vsyncadd [#allocation17], 4294967264  ;;  %vm184_vm0 = vcmask 130048   ;;  %v175_v0 = vld [vmem:[#allocation4] sm:$0xff]  ;;  %v176_v1 = vld [vmem:[#allocation4 + $0x8] sm:$0xff] }
  0xa6   :  { %v167_v2 = vld [vmem:[%s4534_s0] sm:$0xff]  ;;  %v2837_v3 = vpack.c.bf16 %v176_v1, %v175_v0  ;;  %v168_v4 = vld [vmem:[%s4534_s0 + $0x8] sm:$0xff]  ;;  %v169_v5 = vld [vmem:[%s4534_s0 + $0x10] sm:$0xff] }
  0xa7   :  { %2483 = vmatprep.mubr.msk.f32.mxu0 %vm184_vm0, %v167_v2  ;;  %v323_v6 = vld [vmem:[#allocation7 + $0x8] sm:$0xff]  ;;  %v326_v7 = vld [vmem:[#allocation7 + $0x20] sm:$0xff]  ;;  %v325_v10 = vld [vmem:[#allocation7 + $0x18] sm:$0xff] }
  0xa8   :  { %2838 = vmatprep.subr.bf16.mxu0 %v2837_v3  ;;  %v2841_v8 = vpack.c.bf16 %v326_v7, %v323_v6  ;;  %v322_v9 = vld [vmem:[#allocation7] sm:$0xff]  ;;  %v324_v11 = vld [vmem:[#allocation7 + $0x10] sm:$0xff]  ;;  %v327_v13 = vld [vmem:[#allocation7 + $0x28] sm:$0xff] }
  0xa9   :  { %2840 = vmatpush3.bf16.msra.mxu0 %v2837_v3  ;;  %v2843_v12 = vpack.c.bf16 %v325_v10, %v322_v9  ;;  %v329_v14 = vld [vmem:[#allocation7 + $0x38] sm:$0xff]  ;;  %v332_v15 = vld [vmem:[#allocation7 + $0x50] sm:$0xff]  ;;  %v170_v16 = vld [vmem:[%s4534_s0 + $0x18] sm:$0xff]  ;;  %v2873_v17 = vpack.c.bf16 %v327_v13, %v324_v11 }
  0xaa   :  { %2842 = vmatprep.subr.bf16.mxu1 %v2841_v8  ;;  %v2845_v18 = vpack.c.bf16 %v332_v15, %v329_v14  ;;  %v328_v19 = vld [vmem:[#allocation7 + $0x30] sm:$0xff]  ;;  %v331_v20 = vld [vmem:[#allocation7 + $0x48] sm:$0xff]  ;;  %v330_v21 = vld [vmem:[#allocation7 + $0x40] sm:$0xff] }
  0xab   :  { %v171_v22 = vld [vmem:[%s4534_s0 + $0x20] sm:$0xff]  ;;  %2844 = vmatpush1.bf16.msra.mxu1 %v2843_v12  ;;  %v2847_v23 = vpack.c.bf16 %v331_v20, %v328_v19  ;;  %v333_v24 = vld [vmem:[#allocation7 + $0x58] sm:$0xff]  ;;  %v335_v25 = vld [vmem:[#allocation7 + $0x68] sm:$0xff]  ;;  %2874 = vmatprep.subr.bf16.mxu0 %v2873_v17  ;;  %v3672_v19 = vmov 0.0  }
  0xac   :  { %2484 = vmatmul.mubr.msk.f32.vlgmr.msra.gmra.mrb[0].mxu0 %vm184_vm0, %v168_v4  ;;  %v338_v26 = vld [vmem:[#allocation7 + $0x80] sm:$0xff]  ;;  %v2877_v27 = vpack.c.bf16 %v333_v24, %v330_v21  ;;  %v337_v30 = vld [vmem:[#allocation7 + $0x78] sm:$0xff]  ;;  %v336_v31 = vld [vmem:[#allocation7 + $0x70] sm:$0xff]  ;;  %2846 = vmatprep.subr.bf16.mxu1 %v2845_v18  ;;  %165 = vst [vmem:[#allocation19] sm:$0xff] %v3672_v19 }
  0xad   :  { %2486 = vmatprep.mubr.msk.f32.mxu0 %vm184_vm0, %v169_v5  ;;  %v2849_v28 = vpack.c.bf16 %v338_v26, %v335_v25  ;;  %v334_v29 = vld [vmem:[#allocation7 + $0x60] sm:$0xff]  ;;  %2876 = vmatpush3.bf16.msra.mxu0 %v2873_v17  ;;  %v339_v32 = vld [vmem:[#allocation7 + $0x88] sm:$0xff]  ;;  %v341_v33 = vld [vmem:[#allocation7 + $0x98] sm:$0xff]  ;;  %166 = vst [vmem:[#allocation19 + $0x8] sm:$0xff] %v3672_v19 }
  0xae   :  { %v344_v34 = vld [vmem:[#allocation7 + $0xb0] sm:$0xff]  ;;  %2878 = vmatprep.subr.bf16.mxu0 %v2877_v27  ;;  %v2881_v35 = vpack.c.bf16 %v339_v32, %v336_v31  ;;  %v2851_v36 = vpack.c.bf16 %v337_v30, %v334_v29  ;;  %v342_v37 = vld [vmem:[#allocation7 + $0xa0] sm:$0xff]  ;;  %v345_v38 = vld [vmem:[#allocation7 + $0xb8] sm:$0xff]  ;;  %451 = vmatprep.mubr.f32.mxu1 %v3672_v19 }
  0xaf   :  { %2848 = vmatpush1.bf16.msra.mxu1 %v2847_v23  ;;  %v172_v39 = vld [vmem:[%s4534_s0 + $0x28] sm:$0xff]  ;;  %v2853_v40 = vpack.c.bf16 %v344_v34, %v341_v33  ;;  %v340_v41 = vld [vmem:[#allocation7 + $0x90] sm:$0xff]  ;;  %v343_v42 = vld [vmem:[#allocation7 + $0xa8] sm:$0xff]  ;;  %v2885_v46 = vpack.c.bf16 %v345_v38, %v342_v37 }
  0xb0   :  { %2487 = vmatmul.mubr.msk.f32.gmra.mrb[2].mxu0 %vm184_vm0, %v170_v16  ;;  %2850 = vmatprep.subr.bf16.mxu1 %v2849_v28  ;;  %v173_v43 = vld [vmem:[%s4534_s0 + $0x30] sm:$0xff]  ;;  %v347_v44 = vld [vmem:[#allocation7 + $0xc8] sm:$0xff]  ;;  %v2855_v47 = vpack.c.bf16 %v343_v42, %v340_v41  ;;  %v348_v48 = vld [vmem:[#allocation7 + $0xd0] sm:$0xff] }
  0xb1   :  { %2489 = vmatprep.mubr.msk.f32.mxu0 %vm184_vm0, %v171_v22  ;;  %2880 = vmatpush3.bf16.msra.mxu0 %v2877_v27  ;;  %v350_v45 = vld [vmem:[#allocation7 + $0xe0] sm:$0xff]  ;;  %v351_v49 = vld [vmem:[#allocation7 + $0xe8] sm:$0xff]  ;;  %v349_v53 = vld [vmem:[#allocation7 + $0xd8] sm:$0xff] }
  0xb2   :  { %2882 = vmatprep.subr.bf16.mxu0 %v2881_v35  ;;  %v174_v50 = vld [vmem:[%s4534_s0 + $0x38] sm:$0xff]  ;;  %v2857_v51 = vpack.c.bf16 %v350_v45, %v347_v44  ;;  %v346_v52 = vld [vmem:[#allocation7 + $0xc0] sm:$0xff]  ;;  %v353_v54 = vld [vmem:[#allocation7 + $0xf8] sm:$0xff]  ;;  %v2889_v56 = vpack.c.bf16 %v351_v49, %v348_v48  ;;  %v372_v45 = vlaneseq }
  0xb3   :  { %2852 = vmatpush1.bf16.msra.mxu1 %v2851_v36  ;;  %v356_v55 = vld [vmem:[#allocation7 + $0x110] sm:$0xff]  ;;  %v2859_v57 = vpack.c.bf16 %v349_v53, %v346_v52  ;;  %v354_v58 = vld [vmem:[#allocation7 + $0x100] sm:$0xff]  ;;  %v357_v59 = vld [vmem:[#allocation7 + $0x118] sm:$0xff] }
  0xb4   :  { %2490 = vmatmul.mubr.msk.f32.gmra.mrb[4].mxu0 %vm184_vm0, %v172_v39  ;;  %2854 = vmatprep.subr.bf16.mxu1 %v2853_v40  ;;  %v2861_v60 = vpack.c.bf16 %v356_v55, %v353_v54  ;;  %v352_v61 = vld [vmem:[#allocation7 + $0xf0] sm:$0xff]  ;;  %v355_v62 = vld [vmem:[#allocation7 + $0x108] sm:$0xff]  ;;  %v362_v0 = vld [vmem:[#allocation7 + $0x140] sm:$0xff]  ;;  %v2893_v1 = vpack.c.bf16 %v357_v59, %v354_v58 }
  0xb5   :  { %2492 = vmatprep.mubr.msk.f32.mxu0 %vm184_vm0, %v173_v43  ;;  %2884 = vmatpush3.bf16.msra.mxu0 %v2881_v35  ;;  %v359_v63 = vld [vmem:[#allocation7 + $0x128] sm:$0xff]  ;;  %v2863_v2 = vpack.c.bf16 %v355_v62, %v352_v61  ;;  %v360_v3 = vld [vmem:[#allocation7 + $0x130] sm:$0xff]  ;;  %v358_v6 = vld [vmem:[#allocation7 + $0x120] sm:$0xff] }
  0xb6   :  { %2886 = vmatprep.subr.bf16.mxu0 %v2885_v46  ;;  %v363_v4 = vld [vmem:[#allocation7 + $0x148] sm:$0xff]  ;;  %v2865_v5 = vpack.c.bf16 %v362_v0, %v359_v63  ;;  %v361_v7 = vld [vmem:[#allocation7 + $0x138] sm:$0xff]  ;;  %v368_v11 = vld [vmem:[#allocation7 + $0x170] sm:$0xff] }
  0xb7   :  { %2856 = vmatpush1.bf16.msra.mxu1 %v2855_v47  ;;  %v2897_v8 = vpack.c.bf16 %v363_v4, %v360_v3  ;;  %v2867_v9 = vpack.c.bf16 %v361_v7, %v358_v6  ;;  %v365_v10 = vld [vmem:[#allocation7 + $0x158] sm:$0xff]  ;;  %v364_v13 = vld [vmem:[#allocation7 + $0x150] sm:$0xff]  ;;  %v367_v14 = vld [vmem:[#allocation7 + $0x168] sm:$0xff] }
  0xb8   :  { %2493 = vmatmul.mubr.msk.f32.gmra.mrb[6].mxu0 %vm184_vm0, %v174_v50  ;;  %2858 = vmatprep.subr.bf16.mxu1 %v2857_v51  ;;  %v2869_v12 = vpack.c.bf16 %v368_v11, %v365_v10  ;;  %v2871_v15 = vpack.c.bf16 %v367_v14, %v364_v13  ;;  %v366_v16 = vld [vmem:[#allocation7 + $0x160] sm:$0xff]  ;;  %v369_v17 = vld [vmem:[#allocation7 + $0x178] sm:$0xff]  ;;  %v2262_v20 = vld [vmem:[%s4536_s2] ss:$0 sm:$0xff]  ;;  %s3963_s2 = smov 0  }
  0xb9   :  { %2888 = vmatpush3.bf16.msra.mxu0 %v2885_v46  ;;  %v2901_v18 = vpack.c.bf16 %v369_v17, %v366_v16  ;;  %v373_v46 = vshrl.u32 %v372_v45, 7  ;;  %v629_v50 = vld [vmem:[#allocation12] sm:$0x7]  ;;  %v3911_v51 = vld [vmem:[#allocation12 + $0x3] sm:$0x7] }
  0xba   :  { %2890 = vmatprep.subr.bf16.mxu0 %v2889_v56  ;;  %4597 = vst [vmem:[#allocation28_spill] sm:$0xff] %v3911_v51  ;;  %v3913_v52 = vld [vmem:[#allocation15] sm:$0x7]  ;;  %v370_v62 = vld [vmem:[#allocation9] sm:$0x7] }
  0xbb   :  { %2860 = vmatpush1.bf16.msra.mxu1 %v2859_v57  ;;  %v3907_v47 = vsub.s32 0, %v373_v46  ;;  %v3909_v48 = vsub.s32 1, %v373_v46  ;;  %v382_v49 = vsub.s32 2, %v373_v46  ;;  %4598 = vst [vmem:[#allocation29_spill] sm:$0xff] %v3913_v52 }
  0xbc   :  { %2862 = vmatprep.subr.bf16.mxu1 %v2861_v60 }
  0xbd   :  { %2892 = vmatpush3.bf16.msra.mxu0 %v2889_v56  ;;  %4595 = vst [vmem:[#allocation26_spill] sm:$0xff] %v3907_v47  ;;  %4596 = vst [vmem:[#allocation27_spill] sm:$0xff] %v3909_v48  ;;  %v3916_v53 = vrot.slane %v629_v50, %v3907_v47  ;;  %v3923_v56 = vrot.slane %v629_v50, %v3909_v48  ;;  %v3929_v59 = vrot.slane %v629_v50, %v382_v49 }
  0xbe   :  { %2894 = vmatprep.subr.bf16.mxu0 %v2893_v1  ;;  %v3932_v60 = vrot.slane %v3911_v51, %v382_v49  ;;  %v3935_v61 = vrot.slane %v3913_v52, %v382_v49  ;;  %v3938_v63 = vrot.slane %v370_v62, %v3907_v47  ;;  %v3941_v0 = vrot.slane %v370_v62, %v3909_v48 }
  0xbf   :  { %2864 = vmatpush1.bf16.msra.mxu1 %v2863_v2 }
  0xc0   :  { %2866 = vmatprep.subr.bf16.mxu1 %v2865_v5  ;;  %4599 = vst [vmem:[#allocation30_spill] sm:$0xff] %v3932_v60  ;;  %4600 = vst [vmem:[#allocation31_spill] sm:$0xff] %v3935_v61 }
  0xc1   :  { %2896 = vmatpush3.bf16.msra.mxu0 %v2893_v1  ;;  %v383_v1 = vrot.slane %v370_v62, %v382_v49 }
  0xc2   :  { %2898 = vmatprep.subr.bf16.mxu0 %v2897_v8 }
  0xc3   :  { %2868 = vmatpush1.bf16.msra.mxu1 %v2867_v9 }
  0xc4   :  { %2870 = vmatprep.subr.bf16.mxu1 %v2869_v12 }
  0xc5   :  { %2900 = vmatpush3.bf16.msra.mxu0 %v2897_v8 }
  0xc6   :  { %2902 = vmatprep.subr.bf16.mxu0 %v2901_v18 }
  0xc7   :  { %2872 = vmatpush1.bf16.msra.mxu1 %v2871_v15 }
  0xc9   :  { %2904 = vmatpush3.bf16.msra.mxu0 %v2901_v18 }
 0x17f   :  { %v2485_v21 = vpop.f32.mrb[0].mxu0 }
 0x180   :  { %v281_v22 = vadd.f32 %v2485_v21, %v2262_v20  ;;  %v275_v23 = vpop.f32.mrb[1].mxu0 }
 0x181   :  { %v276_v24 = vadd.f32 %v2262_v20, %v275_v23 }
 0x182   :  { %v315_v27 = vmax.f32 %v281_v22, 0.0 }
 0x183   :  { %v314_v25 = vmax.f32 %v276_v24, 0.0  ;;  %v2488_v26 = vpop.f32.mrb[2].mxu0 }
 0x184   :  { %v291_v28 = vadd.f32 %v2488_v26, %v2262_v20  ;;  %v285_v29 = vpop.f32.mrb[3].mxu0 }
 0x185   :  { %v286_v30 = vadd.f32 %v2262_v20, %v285_v29  ;;  %452 = vmatmul.mubr.f32.vlgmr.msra.gmra.mrb[0].mxu1 %v314_v25  ;;  %2527 = vmatprep.mubr.f32.mxu0 %v314_v25 }
 0x186   :  { %v317_v31 = vmax.f32 %v291_v28, 0.0  ;;  %2528 = vmatmul.mubr.f32.vlgmr.msra.gmra.mrb[8].mxu0 %v315_v27  ;;  %457 = vmatprep.mubr.f32.mxu1 %v3672_v19 }
 0x187   :  { %v316_v32 = vmax.f32 %v286_v30, 0.0  ;;  %v2491_v33 = vpop.f32.mrb[4].mxu0 }
 0x188   :  { %v301_v34 = vadd.f32 %v2491_v33, %v2262_v20  ;;  %v295_v35 = vpop.f32.mrb[5].mxu0 }
 0x189   :  { %458 = vmatmul.mubr.f32.gmra.mrb[2].mxu1 %v315_v27  ;;  %2530 = vmatprep.mubr.f32.mxu0 %v316_v32  ;;  %v296_v36 = vadd.f32 %v2262_v20, %v295_v35 }
 0x18a   :  { %2531 = vmatmul.mubr.f32.gmra.mrb[10].mxu0 %v317_v31  ;;  %v319_v37 = vmax.f32 %v301_v34, 0.0  ;;  %463 = vmatprep.mubr.f32.mxu1 %v3672_v19 }
 0x18b   :  { %v318_v38 = vmax.f32 %v296_v36, 0.0  ;;  %v2494_v39 = vpop.f32.mrb[6].mxu0 }
 0x18c   :  { %v311_v40 = vadd.f32 %v2494_v39, %v2262_v20  ;;  %v305_v41 = vpop.f32.mrb[7].mxu0 }
 0x18d   :  { %464 = vmatmul.mubr.f32.gmra.mrb[4].mxu1 %v316_v32  ;;  %2533 = vmatprep.mubr.f32.mxu0 %v318_v38  ;;  %v306_v42 = vadd.f32 %v2262_v20, %v305_v41 }
 0x18e   :  { %469 = vmatprep.mubr.f32.mxu1 %v3672_v19  ;;  %2534 = vmatmul.mubr.f32.gmra.mrb[12].mxu0 %v319_v37  ;;  %v321_v43 = vmax.f32 %v311_v40, 0.0 }
 0x18f   :  { %v320_v44 = vmax.f32 %v306_v42, 0.0 }
 0x191   :  { %470 = vmatmul.mubr.f32.gmra.mrb[6].mxu1 %v317_v31  ;;  %2536 = vmatprep.mubr.f32.mxu0 %v320_v44 }
 0x192   :  { %475 = vmatprep.mubr.f32.mxu1 %v3672_v19  ;;  %2537 = vmatmul.mubr.f32.gmra.mrb[14].mxu0 %v321_v43 }
 0x195   :  { %476 = vmatmul.mubr.f32.gmra.mrb[8].mxu1 %v318_v38 }
 0x196   :  { %481 = vmatprep.mubr.f32.mxu1 %v3672_v19 }
 0x199   :  { %482 = vmatmul.mubr.f32.gmra.mrb[10].mxu1 %v319_v37 }
 0x19a   :  { %487 = vmatprep.mubr.f32.mxu1 %v3672_v19 }
 0x19d   :  { %488 = vmatmul.mubr.f32.gmra.mrb[12].mxu1 %v320_v44 }
 0x19e   :  { %493 = vmatprep.mubr.f32.mxu1 %v3672_v19 }
 0x1a1   :  { %494 = vmatmul.mubr.f32.gmra.mrb[14].mxu1 %v321_v43 }
 0x258   :  { %v453_v2 = vpop.f32.mrb[0].mxu1 }
 0x259   :  { %v454_v3 = vadd.f32 %v453_v2, %v3938_v63  ;;  %v455_v4 = vpop.f32.mrb[1].mxu1  ;;  %v2529_v5 = vpop.f32.mrb[8].mxu0  ;;  %v3961_v2 = vmov 0.0  }
 0x25a   :  { %v456_v6 = vadd.f32 %v455_v4, %v3941_v0  ;;  %v572_v7 = vadd.f32 %v2529_v5, %v383_v1  ;;  %v566_v8 = vpop.f32.mrb[9].mxu0 }
 0x25b   :  { %605 = vst [vmem:[#allocation2] sm:$0xff] %v454_v3  ;;  %v567_v9 = vadd.f32 %v566_v8, %v383_v1 }
 0x25c   :  { %606 = vst [vmem:[#allocation2 + $0x8] sm:$0xff] %v456_v6  ;;  %610 = vst [vmem:[#allocation2 + $0x28] sm:$0xff] %v572_v7  ;;  %v459_v10 = vpop.f32.mrb[2].mxu1 }
 0x25d   :  { %607 = vst [vmem:[#allocation2 + $0x10] sm:$0xff] %v567_v9  ;;  %v460_v11 = vadd.f32 %v459_v10, %v3938_v63  ;;  %v461_v12 = vpop.f32.mrb[3].mxu1  ;;  %v2532_v13 = vpop.f32.mrb[10].mxu0 }
 0x25e   :  { %v462_v14 = vadd.f32 %v461_v12, %v3941_v0  ;;  %v582_v15 = vadd.f32 %v2532_v13, %v383_v1  ;;  %v576_v16 = vpop.f32.mrb[11].mxu0 }
 0x25f   :  { %608 = vst [vmem:[#allocation2 + $0x18] sm:$0xff] %v460_v11  ;;  %v577_v17 = vadd.f32 %v576_v16, %v383_v1 }
 0x260   :  { %609 = vst [vmem:[#allocation2 + $0x20] sm:$0xff] %v462_v14  ;;  %616 = vst [vmem:[#allocation2 + $0x58] sm:$0xff] %v582_v15  ;;  %v465_v18 = vpop.f32.mrb[4].mxu1 }
 0x261   :  { %613 = vst [vmem:[#allocation2 + $0x40] sm:$0xff] %v577_v17  ;;  %v466_v19 = vadd.f32 %v465_v18, %v3938_v63  ;;  %v467_v20 = vpop.f32.mrb[5].mxu1  ;;  %v2535_v21 = vpop.f32.mrb[12].mxu0 }
 0x262   :  { %v468_v22 = vadd.f32 %v467_v20, %v3941_v0  ;;  %v592_v23 = vadd.f32 %v2535_v21, %v383_v1  ;;  %v586_v24 = vpop.f32.mrb[13].mxu0 }
 0x263   :  { %611 = vst [vmem:[#allocation2 + $0x30] sm:$0xff] %v466_v19  ;;  %v587_v25 = vadd.f32 %v586_v24, %v383_v1 }
 0x264   :  { %612 = vst [vmem:[#allocation2 + $0x38] sm:$0xff] %v468_v22  ;;  %v471_v26 = vpop.f32.mrb[6].mxu1  ;;  %622 = vst [vmem:[#allocation2 + $0x88] sm:$0xff] %v592_v23 }
 0x265   :  { %v472_v27 = vadd.f32 %v471_v26, %v3938_v63  ;;  %v473_v28 = vpop.f32.mrb[7].mxu1  ;;  %619 = vst [vmem:[#allocation2 + $0x70] sm:$0xff] %v587_v25  ;;  %v2538_v29 = vpop.f32.mrb[14].mxu0 }
 0x266   :  { %v474_v30 = vadd.f32 %v473_v28, %v3941_v0  ;;  %v602_v31 = vadd.f32 %v2538_v29, %v383_v1  ;;  %v596_v32 = vpop.f32.mrb[15].mxu0 }
 0x267   :  { %614 = vst [vmem:[#allocation2 + $0x48] sm:$0xff] %v472_v27  ;;  %v597_v33 = vadd.f32 %v596_v32, %v383_v1  ;;  %v3959_v1 = vmov 0.0  }
 0x268   :  { %615 = vst [vmem:[#allocation2 + $0x50] sm:$0xff] %v474_v30  ;;  %v477_v34 = vpop.f32.mrb[8].mxu1  ;;  %628 = vst [vmem:[#allocation2 + $0xb8] sm:$0xff] %v602_v31 }
 0x269   :  { %v478_v35 = vadd.f32 %v477_v34, %v3938_v63  ;;  %v479_v36 = vpop.f32.mrb[9].mxu1  ;;  %625 = vst [vmem:[#allocation2 + $0xa0] sm:$0xff] %v597_v33 }
 0x26a   :  { %v480_v37 = vadd.f32 %v479_v36, %v3941_v0 }
 0x26b   :  { %617 = vst [vmem:[#allocation2 + $0x60] sm:$0xff] %v478_v35 }
 0x26c   :  { %618 = vst [vmem:[#allocation2 + $0x68] sm:$0xff] %v480_v37  ;;  %v483_v38 = vpop.f32.mrb[10].mxu1 }
 0x26d   :  { %v484_v39 = vadd.f32 %v483_v38, %v3938_v63  ;;  %v485_v40 = vpop.f32.mrb[11].mxu1 }
 0x26e   :  { %v486_v41 = vadd.f32 %v485_v40, %v3941_v0 }
 0x26f   :  { %620 = vst [vmem:[#allocation2 + $0x78] sm:$0xff] %v484_v39 }
 0x270   :  { %621 = vst [vmem:[#allocation2 + $0x80] sm:$0xff] %v486_v41  ;;  %v489_v42 = vpop.f32.mrb[12].mxu1 }
 0x271   :  { %v490_v43 = vadd.f32 %v489_v42, %v3938_v63  ;;  %v491_v44 = vpop.f32.mrb[13].mxu1 }
 0x272   :  { %v492_v45 = vadd.f32 %v491_v44, %v3941_v0 }
 0x273   :  { %623 = vst [vmem:[#allocation2 + $0x90] sm:$0xff] %v490_v43 }
 0x274   :  { %624 = vst [vmem:[#allocation2 + $0x98] sm:$0xff] %v492_v45  ;;  %v495_v46 = vpop.f32.mrb[14].mxu1 }
 0x275   :  { %v496_v49 = vadd.f32 %v495_v46, %v3938_v63  ;;  %v497_v50 = vpop.f32.mrb[15].mxu1 }
 0x276   :  { %v498_v62 = vadd.f32 %v497_v50, %v3941_v0 }
 0x277   :  { %626 = vst [vmem:[#allocation2 + $0xa8] sm:$0xff] %v496_v49 }
 0x278   :  { %627 = vst [vmem:[#allocation2 + $0xb0] sm:$0xff] %v498_v62 }
 0x279 LB: > { %4601 = vst [vmem:[#allocation32_spill] sm:$0xff] %v3647_v1  ;;  %v694_v63 = vld [vmem:[#allocation10 + $0x8] sm:$0xff]  ;;  %v697_v0 = vld [vmem:[#allocation10 + $0x20] sm:$0xff]  ;;  %v696_v5 = vld [vmem:[#allocation10 + $0x18] sm:$0xff]  ;;  %v4568_v8 = vmov 0.0|0.0   ;;  %v4549_v9 = vmov 0.0   ;;  %s3655_s2 = sphi %s3963_s2, %s688_s2   ;;  %v3651_v2 = vphi %v3961_v2, %v4678_v2   ;;  %v3647_v1 = vphi %v3959_v1, %v4677_v1  }
 0x27a   : > { %v693_v3 = vld [vmem:[#allocation10] sm:$0xff]  ;;  %v3974_v4 = vpack.c.bf16 %v697_v0, %v694_v63  ;;  %v700_v6 = vld [vmem:[#allocation10 + $0x38] sm:$0xff]  ;;  %v703_v7 = vld [vmem:[#allocation10 + $0x50] sm:$0xff]  ;;  %2937 = vmatprep.subr.bf16.mxu1 %v4568_v8  ;;  %805 = vmatprep.mubr.f32.mxu0 %v4549_v9  ;;  %vm3675_vm1 = vmmov 0   ;;  %s4230_s19 = sshll.u32 %s3655_s2, 4  ;;  %s688_s2 = sadd.s32 1, %s3655_s2  }
 0x27b   : > { %v3978_v10 = vpack.c.bf16 %v696_v5, %v693_v3  ;;  %v3980_v11 = vpack.c.bf16 %v703_v7, %v700_v6  ;;  %v699_v12 = vld [vmem:[#allocation10 + $0x30] sm:$0xff]  ;;  %v702_v13 = vld [vmem:[#allocation10 + $0x48] sm:$0xff]  ;;  %2571 = vmatprep.mubr.msk.f32.mxu1 %vm3675_vm1, %v4549_v9  ;;  %v709_v15 = vld [vmem:[#allocation10 + $0x80] sm:$0xff]  ;;  %s1072_s20 = sshra.s32 %s4230_s19, 3  ;;  %s2291_s8 = sadd.s32 8, %s4230_s19 }
 0x27c   : > { %v706_v14 = vld [vmem:[#allocation10 + $0x68] sm:$0xff]  ;;  %2906 = vmatprep.subr.bf16.mxu0 %v3974_v4  ;;  %v3986_v16 = vpack.c.bf16 %v702_v13, %v699_v12  ;;  %v705_v18 = vld [vmem:[#allocation10 + $0x60] sm:$0xff]  ;;  %v708_v19 = vld [vmem:[#allocation10 + $0x78] sm:$0xff]  ;;  %s2289_s28 = smul.u32 24, %s1072_s20  ;;  %s1693_s5 = sshra.s32 %s2291_s8, 3 }
 0x27d   : > { %2908 = vmatpush1.bf16.msra.mxu0 %v3978_v10  ;;  %v3989_v17 = vpack.c.bf16 %v709_v15, %v706_v14  ;;  %v712_v20 = vld [vmem:[#allocation10 + $0x98] sm:$0xff]  ;;  %v715_v21 = vld [vmem:[#allocation10 + $0xb0] sm:$0xff]  ;;  %v3992_v22 = vpack.c.bf16 %v708_v19, %v705_v18  ;;  %v714_v25 = vld [vmem:[#allocation10 + $0xa8] sm:$0xff]  ;;  %s2292_s21 = smul.u32 24, %s1693_s5  ;;  %s1311_s12 = scalar_lea.vmem [#allocation3], %s4230_s19 }
 0x27e   : > { %2910 = vmatprep.subr.bf16.mxu0 %v3980_v11  ;;  %v3995_v23 = vpack.c.bf16 %v715_v21, %v712_v20  ;;  %v711_v24 = vld [vmem:[#allocation10 + $0x90] sm:$0xff]  ;;  %v718_v26 = vld [vmem:[#allocation10 + $0xc8] sm:$0xff]  ;;  %v721_v27 = vld [vmem:[#allocation10 + $0xe0] sm:$0xff]  ;;  %s1076_s30 = scalar_lea.vmem [#allocation2], %s2289_s28  ;;  %p685_p2 = scmp.ge.s32.totalorder %s688_s2, 4  }
 0x27f   : > { %v695_v28 = vld [vmem:[#allocation10 + $0x10] sm:$0xff]  ;;  %v698_v29 = vld [vmem:[#allocation10 + $0x28] sm:$0xff]  ;;  %v701_v31 = vld [vmem:[#allocation10 + $0x40] sm:$0xff]  ;;  %v4000_v33 = vpack.c.bf16 %v714_v25, %v711_v24  ;;  %v4003_v34 = vpack.c.bf16 %v721_v27, %v718_v26  ;;  %s4334_s3 = scalar_lea.vmem [#allocation2], %s2292_s21 }
 0x280   : > { %v3997_v30 = vpack.c.bf16 %v698_v29, %v695_v28  ;;  %v704_v32 = vld [vmem:[#allocation10 + $0x58] sm:$0xff]  ;;  %v717_v35 = vld [vmem:[#allocation10 + $0xc0] sm:$0xff]  ;;  %v727_v39 = vld [vmem:[#allocation10 + $0x110] sm:$0xff] }
 0x281   : > { %2912 = vmatpush1.bf16.msra.mxu0 %v3986_v16  ;;  %v720_v36 = vld [vmem:[#allocation10 + $0xd8] sm:$0xff]  ;;  %v4006_v38 = vpack.c.bf16 %v704_v32, %v701_v31  ;;  %v707_v40 = vld [vmem:[#allocation10 + $0x70] sm:$0xff]  ;;  %v710_v41 = vld [vmem:[#allocation10 + $0x88] sm:$0xff] }
 0x282   : > { %2914 = vmatprep.subr.bf16.mxu0 %v3989_v17  ;;  %v724_v37 = vld [vmem:[#allocation10 + $0xf8] sm:$0xff]  ;;  %2939 = vmatpush3.bf16.msra.mxu1 %v3997_v30  ;;  %v4010_v42 = vpack.c.bf16 %v720_v36, %v717_v35  ;;  %v723_v44 = vld [vmem:[#allocation10 + $0xf0] sm:$0xff]  ;;  %v726_v45 = vld [vmem:[#allocation10 + $0x108] sm:$0xff]  ;;  %v4016_v49 = vpack.c.bf16 %v710_v41, %v707_v40 }
 0x283   : > { %2940 = vmatprep.subr.bf16.mxu1 %v4568_v8  ;;  %v4013_v43 = vpack.c.bf16 %v727_v39, %v724_v37  ;;  %v730_v46 = vld [vmem:[#allocation10 + $0x128] sm:$0xff]  ;;  %v733_v50 = vld [vmem:[#allocation10 + $0x140] sm:$0xff]  ;;  %v716_v63 = vld [vmem:[#allocation10 + $0xb8] sm:$0xff]  ;;  %v4020_v0 = vpack.c.bf16 %v726_v45, %v723_v44 }
 0x284   : > { %v713_v62 = vld [vmem:[#allocation10 + $0xa0] sm:$0xff]  ;;  %v4023_v3 = vpack.c.bf16 %v733_v50, %v730_v46  ;;  %v732_v6 = vld [vmem:[#allocation10 + $0x138] sm:$0xff]  ;;  %v739_v13 = vld [vmem:[#allocation10 + $0x170] sm:$0xff] }
 0x285   : > { %2916 = vmatpush1.bf16.msra.mxu0 %v3992_v22  ;;  %v729_v5 = vld [vmem:[#allocation10 + $0x120] sm:$0xff]  ;;  %v736_v7 = vld [vmem:[#allocation10 + $0x158] sm:$0xff]  ;;  %v4026_v12 = vpack.c.bf16 %v716_v63, %v713_v62  ;;  %v719_v14 = vld [vmem:[#allocation10 + $0xd0] sm:$0xff] }
 0x286   : > { %2918 = vmatprep.subr.bf16.mxu0 %v3995_v23  ;;  %2942 = vmatpush3.bf16.msra.mxu1 %v4006_v38  ;;  %v722_v15 = vld [vmem:[#allocation10 + $0xe8] sm:$0xff]  ;;  %v4030_v18 = vpack.c.bf16 %v732_v6, %v729_v5  ;;  %v4033_v19 = vpack.c.bf16 %v739_v13, %v736_v7  ;;  %v735_v20 = vld [vmem:[#allocation10 + $0x150] sm:$0xff]  ;;  %v725_v25 = vld [vmem:[#allocation10 + $0x100] sm:$0xff] }
 0x287   : > { %2943 = vmatprep.subr.bf16.mxu1 %v4568_v8  ;;  %v738_v21 = vld [vmem:[#allocation10 + $0x168] sm:$0xff]  ;;  %v4036_v24 = vpack.c.bf16 %v722_v15, %v719_v14  ;;  %v728_v26 = vld [vmem:[#allocation10 + $0x118] sm:$0xff]  ;;  %v887_v28 = vld [vmem:[#allocation10 + $0x1a0] sm:$0xff] }
 0x288   : > { %v884_v27 = vld [vmem:[#allocation10 + $0x188] sm:$0xff]  ;;  %v4040_v29 = vpack.c.bf16 %v738_v21, %v735_v20  ;;  %v4044_v31 = vpack.c.bf16 %v728_v26, %v725_v25  ;;  %v731_v32 = vld [vmem:[#allocation10 + $0x130] sm:$0xff]  ;;  %v883_v36 = vld [vmem:[#allocation10 + $0x180] sm:$0xff] }
 0x289   : > { %2920 = vmatpush1.bf16.msra.mxu0 %v4000_v33  ;;  %v4046_v35 = vpack.c.bf16 %v887_v28, %v884_v27  ;;  %v886_v37 = vld [vmem:[#allocation10 + $0x198] sm:$0xff]  ;;  %v734_v39 = vld [vmem:[#allocation10 + $0x148] sm:$0xff]  ;;  %v893_v41 = vld [vmem:[#allocation10 + $0x1d0] sm:$0xff] }
 0x28a   : > { %2922 = vmatprep.subr.bf16.mxu0 %v4003_v34  ;;  %2945 = vmatpush3.bf16.msra.mxu1 %v4016_v49  ;;  %v890_v40 = vld [vmem:[#allocation10 + $0x1b8] sm:$0xff]  ;;  %v4050_v44 = vpack.c.bf16 %v886_v37, %v883_v36  ;;  %v4053_v45 = vpack.c.bf16 %v734_v39, %v731_v32  ;;  %v737_v46 = vld [vmem:[#allocation10 + $0x160] sm:$0xff]  ;;  %v889_v62 = vld [vmem:[#allocation10 + $0x1b0] sm:$0xff] }
 0x28b   : > { %2946 = vmatprep.subr.bf16.mxu1 %v4568_v8  ;;  %v4056_v50 = vpack.c.bf16 %v893_v41, %v890_v40  ;;  %v892_v63 = vld [vmem:[#allocation10 + $0x1c8] sm:$0xff]  ;;  %v740_v5 = vld [vmem:[#allocation10 + $0x178] sm:$0xff]  ;;  %v899_v7 = vld [vmem:[#allocation10 + $0x200] sm:$0xff] }
 0x28c   : > { %v896_v6 = vld [vmem:[#allocation10 + $0x1e8] sm:$0xff]  ;;  %v4061_v13 = vpack.c.bf16 %v892_v63, %v889_v62  ;;  %v4065_v14 = vpack.c.bf16 %v740_v5, %v737_v46  ;;  %v885_v15 = vld [vmem:[#allocation10 + $0x190] sm:$0xff]  ;;  %v895_v21 = vld [vmem:[#allocation10 + $0x1e0] sm:$0xff] }
 0x28d   : > { %2924 = vmatpush1.bf16.msra.mxu0 %v4010_v42  ;;  %v4068_v20 = vpack.c.bf16 %v899_v7, %v896_v6  ;;  %v898_v25 = vld [vmem:[#allocation10 + $0x1f8] sm:$0xff]  ;;  %v888_v26 = vld [vmem:[#allocation10 + $0x1a8] sm:$0xff]  ;;  %v905_v28 = vld [vmem:[#allocation10 + $0x230] sm:$0xff] }
 0x28e   : > { %2926 = vmatprep.subr.bf16.mxu0 %v4013_v43  ;;  %2948 = vmatpush3.bf16.msra.mxu1 %v4026_v12  ;;  %v902_v27 = vld [vmem:[#allocation10 + $0x218] sm:$0xff]  ;;  %v4072_v32 = vpack.c.bf16 %v898_v25, %v895_v21  ;;  %v4075_v36 = vpack.c.bf16 %v888_v26, %v885_v15  ;;  %v901_v39 = vld [vmem:[#allocation10 + $0x210] sm:$0xff]  ;;  %v904_v40 = vld [vmem:[#allocation10 + $0x228] sm:$0xff] }
 0x28f   : > { %2949 = vmatprep.subr.bf16.mxu1 %v4568_v8  ;;  %v4078_v37 = vpack.c.bf16 %v905_v28, %v902_v27  ;;  %v891_v41 = vld [vmem:[#allocation10 + $0x1c0] sm:$0xff]  ;;  %v894_v46 = vld [vmem:[#allocation10 + $0x1d8] sm:$0xff]  ;;  %v4083_v62 = vpack.c.bf16 %v904_v40, %v901_v39  ;;  %v897_v5 = vld [vmem:[#allocation10 + $0x1f0] sm:$0xff] }
 0x290   : > { %v4086_v63 = vpack.c.bf16 %v894_v46, %v891_v41  ;;  %v900_v6 = vld [vmem:[#allocation10 + $0x208] sm:$0xff]  ;;  %v903_v15 = vld [vmem:[#allocation10 + $0x220] sm:$0xff]  ;;  %v906_v21 = vld [vmem:[#allocation10 + $0x238] sm:$0xff] }
 0x291   : > { %2928 = vmatpush1.bf16.msra.mxu0 %v4020_v0  ;;  %v4094_v7 = vpack.c.bf16 %v900_v6, %v897_v5  ;;  %v4098_v25 = vpack.c.bf16 %v906_v21, %v903_v15  ;;  %v908_v26 = vld [vmem:[#allocation10 + $0x248] sm:$0xff]  ;;  %v911_v27 = vld [vmem:[#allocation10 + $0x260] sm:$0xff]  ;;  %v910_v40 = vld [vmem:[#allocation10 + $0x258] sm:$0xff] }
 0x292   : > { %2930 = vmatprep.subr.bf16.mxu0 %v4023_v3  ;;  %2951 = vmatpush3.bf16.msra.mxu1 %v4036_v24  ;;  %v4103_v28 = vpack.c.bf16 %v911_v27, %v908_v26  ;;  %v907_v39 = vld [vmem:[#allocation10 + $0x240] sm:$0xff]  ;;  %v909_v41 = vld [vmem:[#allocation10 + $0x250] sm:$0xff]  ;;  %v912_v5 = vld [vmem:[#allocation10 + $0x268] sm:$0xff] }
 0x293   : > { %2952 = vmatprep.subr.bf16.mxu1 %v4568_v8  ;;  %v4105_v46 = vpack.c.bf16 %v910_v40, %v907_v39  ;;  %v4108_v6 = vpack.c.bf16 %v912_v5, %v909_v41  ;;  %v914_v15 = vld [vmem:[#allocation10 + $0x278] sm:$0xff]  ;;  %v917_v21 = vld [vmem:[#allocation10 + $0x290] sm:$0xff]  ;;  %v916_v27 = vld [vmem:[#allocation10 + $0x288] sm:$0xff] }
 0x294   : > { %v4112_v58 = vpack.c.bf16 %v917_v21, %v914_v15  ;;  %v913_v26 = vld [vmem:[#allocation10 + $0x270] sm:$0xff]  ;;  %v915_v39 = vld [vmem:[#allocation10 + $0x280] sm:$0xff]  ;;  %v918_v40 = vld [vmem:[#allocation10 + $0x298] sm:$0xff] }
 0x295   : > { %2932 = vmatpush1.bf16.msra.mxu0 %v4030_v18  ;;  %v4115_v57 = vpack.c.bf16 %v916_v27, %v913_v26  ;;  %v4118_v41 = vpack.c.bf16 %v918_v40, %v915_v39  ;;  %v920_v5 = vld [vmem:[#allocation10 + $0x2a8] sm:$0xff]  ;;  %v923_v55 = vld [vmem:[#allocation10 + $0x2c0] sm:$0xff]  ;;  %v922_v54 = vld [vmem:[#allocation10 + $0x2b8] sm:$0xff] }
 0x296   : > { %2934 = vmatprep.subr.bf16.mxu0 %v4033_v19  ;;  %2954 = vmatpush3.bf16.msra.mxu1 %v4044_v31  ;;  %v4122_v15 = vpack.c.bf16 %v923_v55, %v920_v5  ;;  %v919_v21 = vld [vmem:[#allocation10 + $0x2a0] sm:$0xff]  ;;  %v924_v27 = vld [vmem:[#allocation10 + $0x2c8] sm:$0xff]  ;;  %v926_v40 = vld [vmem:[#allocation10 + $0x2d8] sm:$0xff] }
 0x297   : > { %2955 = vmatprep.subr.bf16.mxu1 %v4568_v8  ;;  %4602 = vst [vmem:[#allocation33_spill] sm:$0xff] %v4118_v41  ;;  %v4125_v26 = vpack.c.bf16 %v922_v54, %v919_v21  ;;  %v929_v61 = vld [vmem:[#allocation10 + $0x2f0] sm:$0xff]  ;;  %v928_v60 = vld [vmem:[#allocation10 + $0x2e8] sm:$0xff]  ;;  %v927_v48 = vld [vmem:[#allocation10 + $0x2e0] sm:$0xff] }
 0x298   : > { %4603 = vst [vmem:[#allocation34_spill] sm:$0xff] %v4122_v15  ;;  %v4132_v55 = vpack.c.bf16 %v929_v61, %v926_v40  ;;  %v925_v5 = vld [vmem:[#allocation10 + $0x2d0] sm:$0xff]  ;;  %v930_v21 = vld [vmem:[#allocation10 + $0x2f8] sm:$0xff]  ;;  %v1105_v52 = vld [vmem:[#allocation13 + $0x20] sm:$0xff] }
 0x299   : > { %2936 = vmatpush1.bf16.msra.mxu0 %v4040_v29  ;;  %4604 = vst [vmem:[#allocation35_spill] sm:$0xff] %v4125_v26  ;;  %v4135_v54 = vpack.c.bf16 %v928_v60, %v925_v5  ;;  %v1101_v40 = vld [vmem:[#allocation13] sm:$0xff]  ;;  %v1104_v47 = vld [vmem:[#allocation13 + $0x18] sm:$0xff]  ;;  %v1103_v51 = vld [vmem:[#allocation13 + $0x10] sm:$0xff] }
 0x29a   : > { %2962 = vmatprep.subr.bf16.mxu0 %v4046_v35  ;;  %2957 = vmatpush3.bf16.msra.mxu1 %v4053_v45  ;;  %4606 = vst [vmem:[#allocation37_spill] sm:$0xff] %v4132_v55  ;;  %v4145_v60 = vpack.c.bf16 %v1104_v47, %v1101_v40  ;;  %v1106_v5 = vld [vmem:[#allocation13 + $0x28] sm:$0xff]  ;;  %v1109_v40 = vld [vmem:[#allocation13 + $0x40] sm:$0xff] }
 0x29b   : > { %2958 = vmatprep.subr.bf16.mxu1 %v4568_v8  ;;  %4607 = vst [vmem:[#allocation38_spill] sm:$0xff] %v4135_v54  ;;  %v1110_v47 = vld [vmem:[#allocation13 + $0x48] sm:$0xff] }
 0x29c   : > { %806 = vmatmul.mubr.f32.vlgmr.msra.gmra.mrb[0].mxu0 %v3651_v2  ;;  %4610 = vst [vmem:[#allocation41_spill] sm:$0xff] %v4145_v60 }
 0x29d   : > { %2964 = vmatpush1.bf16.msra.mxu0 %v4050_v44  ;;  %995 = vmatprep.mubr.f32.mxu0 %v4549_v9 }
 0x29e   : > { %2966 = vmatprep.subr.bf16.mxu0 %v4056_v50  ;;  %2960 = vmatpush3.bf16.msra.mxu1 %v4065_v14 }
 0x29f   : > { %2993 = vmatprep.subr.bf16.mxu1 %v4568_v8 }
 0x2a1   : > { %2968 = vmatpush1.bf16.msra.mxu0 %v4061_v13  ;;  %2572 = vmatmul.mubr.f32.vlgmr.msra.gmra.mrb[0].mxu1 %v3651_v2 }
 0x2a2   : > { %2970 = vmatprep.subr.bf16.mxu0 %v4068_v20  ;;  %2995 = vmatpush3.bf16.msra.mxu1 %v4075_v36 }
 0x2a3   : > { %2996 = vmatprep.subr.bf16.mxu1 %v4568_v8  ;;  %2606 = vmatprep.mubr.msk.f32.mxu1 %vm3675_vm1, %v4549_v9  ;;  %v921_v9 = vld [vmem:[#allocation10 + $0x2b0] sm:$0xff] }
 0x2a4   : > { %v4128_v39 = vpack.c.bf16 %v924_v27, %v921_v9  ;;  %v4138_v9 = vpack.c.bf16 %v930_v21, %v927_v48  ;;  %v1102_v27 = vld [vmem:[#allocation13 + $0x8] sm:$0xff]  ;;  %v4148_v48 = vpack.c.bf16 %v1106_v5, %v1103_v51  ;;  %v1108_v21 = vld [vmem:[#allocation13 + $0x38] sm:$0xff]  ;;  %v4614_v5 = vmov 0.0  }
 0x2a5   : > { %2972 = vmatpush1.bf16.msra.mxu0 %v4072_v32  ;;  %v4142_v61 = vpack.c.bf16 %v1105_v52, %v1102_v27  ;;  %v1107_v27 = vld [vmem:[#allocation13 + $0x30] sm:$0xff]  ;;  %v1112_v51 = vld [vmem:[#allocation13 + $0x58] sm:$0xff] }
 0x2a6   : > { %2974 = vmatprep.subr.bf16.mxu0 %v4078_v37  ;;  %2998 = vmatpush3.bf16.msra.mxu1 %v4086_v63  ;;  %4605 = vst [vmem:[#allocation36_spill] sm:$0xff] %v4128_v39  ;;  %4608 = vst [vmem:[#allocation39_spill] sm:$0xff] %v4138_v9 }
 0x2a7   : > { %2999 = vmatprep.subr.bf16.mxu1 %v4568_v8  ;;  %4609 = vst [vmem:[#allocation40_spill] sm:$0xff] %v4142_v61  ;;  %4611 = vst [vmem:[#allocation42_spill] sm:$0xff] %v4148_v48 }
 0x2a9   : > { %2976 = vmatpush1.bf16.msra.mxu0 %v4083_v62 }
 0x2aa   : > { %3001 = vmatpush3.bf16.msra.mxu1 %v4094_v7  ;;  %2978 = vmatprep.subr.bf16.mxu0 %v4103_v28 }
 0x2ab   : > { %3002 = vmatprep.subr.bf16.mxu1 %v4568_v8 }
 0x2ad   : > { %2980 = vmatpush1.bf16.msra.mxu0 %v4105_v46 }
 0x2ae   : > { %3004 = vmatpush3.bf16.msra.mxu1 %v4098_v25  ;;  %2982 = vmatprep.subr.bf16.mxu0 %v4112_v58 }
 0x2af   : > { %3005 = vmatprep.subr.bf16.mxu1 %v4568_v8 }
 0x2b1   : > { %2984 = vmatpush1.bf16.msra.mxu0 %v4115_v57 }
 0x2b2   : > { %3007 = vmatpush3.bf16.msra.mxu1 %v4108_v6  ;;  %2986 = vmatprep.subr.bf16.mxu0 %v4122_v15  ;;  %v1147_v15 = vld [vmem:[#allocation13 + $0x170] sm:$0xff] }
 0x2b3   : > { %3008 = vmatprep.subr.bf16.mxu1 %v4568_v8 }
 0x2b5   : > { %2988 = vmatpush1.bf16.msra.mxu0 %v4125_v26  ;;  %v1144_v26 = vld [vmem:[#allocation13 + $0x158] sm:$0xff] }
 0x2b6   : > { %3010 = vmatpush3.bf16.msra.mxu1 %v4118_v41  ;;  %2990 = vmatprep.subr.bf16.mxu0 %v4132_v55  ;;  %v1113_v55 = vld [vmem:[#allocation13 + $0x60] sm:$0xff]  ;;  %v1143_v41 = vld [vmem:[#allocation13 + $0x150] sm:$0xff] }
 0x2b7   : > { %3011 = vmatprep.subr.bf16.mxu1 %v4568_v8 }
 0x2b9   : > { %2992 = vmatpush1.bf16.msra.mxu0 %v4135_v54  ;;  %v1114_v54 = vld [vmem:[#allocation13 + $0x68] sm:$0xff] }
 0x2ba   : > { %3013 = vmatpush3.bf16.msra.mxu1 %v4128_v39  ;;  %3018 = vmatprep.subr.bf16.mxu0 %v4142_v61  ;;  %v4157_v61 = vpack.c.bf16 %v1110_v47, %v1107_v27  ;;  %v1121_v39 = vld [vmem:[#allocation13 + $0xa0] sm:$0xff] }
 0x2bb   : > { %3014 = vmatprep.subr.bf16.mxu1 %v4568_v8 }
 0x2bc   : > { %996 = vmatmul.mubr.f32.vlgmr.msra.gmra.mrb[2].mxu0 %v3647_v1  ;;  %4613 = vst [vmem:[#allocation44_spill] sm:$0xff] %v4157_v61 }
 0x2bd   : > { %3020 = vmatpush1.bf16.msra.mxu0 %v4145_v60  ;;  %1213 = vmatprep.mubr.f32.mxu0 %v4614_v5  ;;  %v1117_v60 = vld [vmem:[#allocation13 + $0x80] sm:$0xff] }
 0x2be   : > { %3016 = vmatpush3.bf16.msra.mxu1 %v4138_v9  ;;  %v1111_v9 = vld [vmem:[#allocation13 + $0x50] sm:$0xff] }
 0x2bf   : > { %3049 = vmatprep.subr.bf16.mxu1 %v4568_v8  ;;  %v4154_v52 = vpack.c.bf16 %v1111_v9, %v1108_v21  ;;  %v4165_v9 = vpack.c.bf16 %v1117_v60, %v1114_v54  ;;  %v1116_v21 = vld [vmem:[#allocation13 + $0x78] sm:$0xff]  ;;  %v1119_v60 = vld [vmem:[#allocation13 + $0x90] sm:$0xff] }
 0x2c0   : > { %v4169_v27 = vpack.c.bf16 %v1116_v21, %v1113_v55  ;;  %v1126_v21 = vld [vmem:[#allocation13 + $0xc8] sm:$0xff] }
 0x2c1   : > { %2607 = vmatmul.mubr.f32.vlgmr.msra.gmra.mrb[2].mxu1 %v3647_v1  ;;  %4612 = vst [vmem:[#allocation43_spill] sm:$0xff] %v4154_v52  ;;  %3022 = vmatprep.subr.bf16.mxu0 %v4154_v52  ;;  %v4161_v1 = vpack.c.bf16 %v1112_v51, %v1109_v40  ;;  %4616 = vst [vmem:[#allocation46_spill] sm:$0xff] %v4165_v9  ;;  %v4619_v40 = vmov 0.0|0.0   ;;  %v1120_v51 = vld [vmem:[#allocation13 + $0x98] sm:$0xff]  ;;  %v1123_v52 = vld [vmem:[#allocation13 + $0xb0] sm:$0xff] }
 0x2c2   : > { %3051 = vmatpush3.bf16.msra.mxu1 %v4148_v48  ;;  %2641 = vmatprep.mubr.msk.f32.mxu1 %vm3675_vm1, %v4614_v5  ;;  %v1115_v48 = vld [vmem:[#allocation13 + $0x70] sm:$0xff]  ;;  %4617 = vst [vmem:[#allocation47_spill] sm:$0xff] %v4169_v27  ;;  %v4177_v54 = vpack.c.bf16 %v1123_v52, %v1120_v51  ;;  %v1125_v51 = vld [vmem:[#allocation13 + $0xc0] sm:$0xff] }
 0x2c3   : > { %3052 = vmatprep.subr.bf16.mxu1 %v4568_v8  ;;  %4615 = vst [vmem:[#allocation45_spill] sm:$0xff] %v4161_v1  ;;  %v1118_v8 = vld [vmem:[#allocation13 + $0x88] sm:$0xff]  ;;  %3024 = vmatpush1.bf16.msra.mxu0 %v4157_v61 }
 0x2c4   : > { %v4171_v47 = vpack.c.bf16 %v1118_v8, %v1115_v48  ;;  %3026 = vmatprep.subr.bf16.mxu0 %v4165_v9  ;;  %4620 = vst [vmem:[#allocation49_spill] sm:$0xff] %v4177_v54  ;;  %v1122_v61 = vld [vmem:[#allocation13 + $0xa8] sm:$0xff]  ;;  %v1124_v8 = vld [vmem:[#allocation13 + $0xb8] sm:$0xff]  ;;  %v1129_v9 = vld [vmem:[#allocation13 + $0xe0] sm:$0xff] }
 0x2c5   : > { %v4180_v55 = vpack.c.bf16 %v1122_v61, %v1119_v60  ;;  %v4183_v48 = vpack.c.bf16 %v1124_v8, %v1121_v39  ;;  %v4187_v52 = vpack.c.bf16 %v1129_v9, %v1126_v21  ;;  %v1130_v60 = vld [vmem:[#allocation13 + $0xe8] sm:$0xff]  ;;  %v1132_v8 = vld [vmem:[#allocation13 + $0xf8] sm:$0xff]  ;;  %v1131_v21 = vld [vmem:[#allocation13 + $0xf0] sm:$0xff] }
 0x2c6   : > { %3054 = vmatpush3.bf16.msra.mxu1 %v4161_v1  ;;  %4618 = vst [vmem:[#allocation48_spill] sm:$0xff] %v4171_v47  ;;  %v1138_v1 = vld [vmem:[#allocation13 + $0x128] sm:$0xff] }
 0x2c7   : > { %3055 = vmatprep.subr.bf16.mxu1 %v4619_v40  ;;  %3028 = vmatpush1.bf16.msra.mxu0 %v4169_v27  ;;  %4621 = vst [vmem:[#allocation50_spill] sm:$0xff] %v4180_v55  ;;  %4622 = vst [vmem:[#allocation51_spill] sm:$0xff] %v4183_v48  ;;  %v1127_v27 = vld [vmem:[#allocation13 + $0xd0] sm:$0xff] }
 0x2c8   : > { %3030 = vmatprep.subr.bf16.mxu0 %v4177_v54  ;;  %4623 = vst [vmem:[#allocation52_spill] sm:$0xff] %v4187_v52  ;;  %v4193_v39 = vpack.c.bf16 %v1130_v60, %v1127_v27  ;;  %v1135_v54 = vld [vmem:[#allocation13 + $0x110] sm:$0xff] }
 0x2c9   : > { %v4197_v9 = vpack.c.bf16 %v1135_v54, %v1132_v8  ;;  %v1139_v54 = vld [vmem:[#allocation13 + $0x130] sm:$0xff]  ;;  %v1142_v8 = vld [vmem:[#allocation13 + $0x148] sm:$0xff] }
 0x2ca   : > { %3057 = vmatpush3.bf16.msra.mxu1 %v4171_v47  ;;  %v1128_v47 = vld [vmem:[#allocation13 + $0xd8] sm:$0xff]  ;;  %4625 = vst [vmem:[#allocation54_spill] sm:$0xff] %v4193_v39 }
 0x2cb   : > { %3058 = vmatprep.subr.bf16.mxu1 %v4619_v40  ;;  %3032 = vmatpush1.bf16.msra.mxu0 %v4180_v55  ;;  %v4190_v61 = vpack.c.bf16 %v1128_v47, %v1125_v51  ;;  %4626 = vst [vmem:[#allocation55_spill] sm:$0xff] %v4197_v9  ;;  %v1133_v55 = vld [vmem:[#allocation13 + $0x100] sm:$0xff]  ;;  %v1136_v51 = vld [vmem:[#allocation13 + $0x118] sm:$0xff] }
 0x2cc   : > { %3034 = vmatprep.subr.bf16.mxu0 %v4187_v52  ;;  %v1141_v52 = vld [vmem:[#allocation13 + $0x140] sm:$0xff]  ;;  %v4203_v27 = vpack.c.bf16 %v1136_v51, %v1133_v55  ;;  %v1146_v55 = vld [vmem:[#allocation13 + $0x168] sm:$0xff]  ;;  %v1148_v51 = vld [vmem:[#allocation13 + $0x178] sm:$0xff] }
 0x2cd   : > { %4624 = vst [vmem:[#allocation53_spill] sm:$0xff] %v4190_v61  ;;  %v4205_v60 = vpack.c.bf16 %v1141_v52, %v1138_v1  ;;  %v4215_v1 = vpack.c.bf16 %v1147_v15, %v1144_v26  ;;  %v1145_v52 = vld [vmem:[#allocation13 + $0x160] sm:$0xff] }
 0x2ce   : > { %3060 = vmatpush3.bf16.msra.mxu1 %v4183_v48  ;;  %v1134_v48 = vld [vmem:[#allocation13 + $0x108] sm:$0xff]  ;;  %4628 = vst [vmem:[#allocation57_spill] sm:$0xff] %v4203_v27 }
 0x2cf   : > { %3061 = vmatprep.subr.bf16.mxu1 %v4619_v40  ;;  %3036 = vmatpush1.bf16.msra.mxu0 %v4190_v61  ;;  %v4200_v47 = vpack.c.bf16 %v1134_v48, %v1131_v21  ;;  %4629 = vst [vmem:[#allocation58_spill] sm:$0xff] %v4205_v60  ;;  %v1137_v61 = vld [vmem:[#allocation13 + $0x120] sm:$0xff]  ;;  %v4211_v21 = vpack.c.bf16 %v1142_v8, %v1139_v54  ;;  %4632 = vst [vmem:[#allocation61_spill] sm:$0xff] %v4215_v1 }
 0x2d0   : > { %3038 = vmatprep.subr.bf16.mxu0 %v4197_v9  ;;  %v1077_v15 = vld [vmem:[%s1076_s30] sm:$0xff]  ;;  %v1079_v9 = vld [vmem:[%s1076_s30 + $0x10] sm:$0xff] }
 0x2d1   : > { %4627 = vst [vmem:[#allocation56_spill] sm:$0xff] %v4200_v47  ;;  %4631 = vst [vmem:[#allocation60_spill] sm:$0xff] %v4211_v21 }
 0x2d2   : > { %3063 = vmatpush3.bf16.msra.mxu1 %v4193_v39  ;;  %v1140_v39 = vld [vmem:[#allocation13 + $0x138] sm:$0xff] }
 0x2d3   : > { %3064 = vmatprep.subr.bf16.mxu1 %v4619_v40  ;;  %3040 = vmatpush1.bf16.msra.mxu0 %v4200_v47  ;;  %v4209_v48 = vpack.c.bf16 %v1140_v39, %v1137_v61  ;;  %v4221_v61 = vpack.c.bf16 %v1148_v51, %v1145_v52 }
 0x2d4   : > { %3042 = vmatprep.subr.bf16.mxu0 %v4205_v60 }
 0x2d5   : > { %4630 = vst [vmem:[#allocation59_spill] sm:$0xff] %v4209_v48  ;;  %4634 = vst [vmem:[#allocation63_spill] sm:$0xff] %v4221_v61 }
 0x2d6   : > { %3066 = vmatpush3.bf16.msra.mxu1 %v4203_v27  ;;  %v4219_v27 = vpack.c.bf16 %v1146_v55, %v1143_v41  ;;  %v1078_v55 = vld [vmem:[%s1076_s30 + $0x8] sm:$0xff] }
 0x2d7   : > { %3067 = vmatprep.subr.bf16.mxu1 %v4619_v40  ;;  %3044 = vmatpush1.bf16.msra.mxu0 %v4209_v48 }
 0x2d8   : > { %4633 = vst [vmem:[#allocation62_spill] sm:$0xff] %v4219_v27  ;;  %3046 = vmatprep.subr.bf16.mxu0 %v4215_v1 }
 0x2da   : > { %3069 = vmatpush3.bf16.msra.mxu1 %v4211_v21 }
 0x2db   : > { %3070 = vmatprep.subr.bf16.mxu1 %v4619_v40  ;;  %3048 = vmatpush1.bf16.msra.mxu0 %v4219_v27 }
 0x2dc   : > { %3074 = vmatprep.subr.bf16.mxu0 %v3974_v4 }
 0x2de   : > { %3072 = vmatpush3.bf16.msra.mxu1 %v4221_v61 }
 0x2df   : > { %3105 = vmatprep.subr.bf16.mxu1 %v4619_v40 }
 0x36f   : > { %v807_v41 = vpop.f32.mrb[0].mxu0 }
 0x370   : > { %v808_v26 = vadd.f32 %v807_v41, %v3916_v53  ;;  %v809_v39 = vpop.f32.mrb[1].mxu0 }
 0x371   : > { %v810_v54 = vadd.f32 %v809_v39, %v3923_v56 }
 0x372   : > { %v1080_v8 = vadd.f32 %v1077_v15, %v808_v26 }
 0x373   : > { %v1087_v51 = vadd.f32 %v1078_v55, %v810_v54 }
 0x374   : > { %v2274_v52 = vmul.f32 -1.442695, %v1080_v8  ;;  %v878_v4 = vpop.f32.mrb[0].mxu1 }
 0x375   : > { %v2275_v61 = vmul.f32 -1.442695, %v1087_v51  ;;  %v2573_v27 = vpop.f32.mrb[1].mxu1  ;;  %v879_v47 = vadd.f32 %v878_v4, %v3929_v59 }
 0x376   : > { %3361 = vpow2.f32 %v2274_v52  ;;  %v1699_v52 = vld [vmem:[%s4334_s3 + $0x8] sm:$0xff] }
 0x377   : > { %3363 = vpow2.f32 %v2275_v61 }
 0x380   : > { %v3362_v1 = vpop.eup %3361 }
 0x381   : > { %v1084_v21 = vadd.f32 1.0, %v3362_v1  ;;  %v3364_v48 = vpop.eup %3363 }
 0x382   : > { %v1091_v60 = vadd.f32 1.0, %v3364_v48 }
 0x383   : > { %3365 = vrcp.f32 %v1084_v21 }
 0x384   : > { %3367 = vrcp.f32 %v1091_v60 }
 0x38d   : > { %v3366_v41 = vpop.eup %3365 }
 0x38e   : > { %v1094_v39 = vmul.f32 %v3366_v41, %v879_v47  ;;  %v3368_v26 = vpop.eup %3367 }
 0x38f   : > { %v1097_v54 = vsub.f32 1.0, %v3368_v26  ;;  %v1099_v27 = vmul.f32 %v3651_v2, %v3368_v26 }
 0x390   : > { %v1095_v15 = vadd.f32 %v1094_v39, %v1079_v9 }
 0x392   : > { %3369 = vtanh.f32 %v1095_v15 }
 0x394   : > { %v1068_v2 = vpop.f32.mrb[2].mxu1 }
 0x39c   : > { %v3370_v8 = vpop.eup %3369 }
 0x39d   : > { %v1098_v55 = vmul.f32 %v3370_v8, %v1097_v54  ;;  %v4653_v8 = vld [vmem:[#allocation32_spill] sm:$0xff] }
 0x39f   : > { %v4237_v61 = vadd.f32 %v1099_v27, %v1098_v55 }
 0x3a1   : > { %1214 = vmatmul.mubr.f32.vlgmr.msra.gmra.mrb[2].mxu0 %v4237_v61  ;;  %2642 = vmatmul.mubr.f32.vlgmr.msra.gmra.mrb[4].mxu1 %v4237_v61 }
 0x3a2   : > { %3076 = vmatpush1.bf16.msra.mxu0 %v3978_v10  ;;  %3107 = vmatpush3.bf16.msra.mxu1 %v3997_v30  ;;  %v2608_v10 = vpop.f32.mrb[3].mxu1  ;;  %v4641_v30 = vld [vmem:[#allocation39_spill] sm:$0xff] }
 0x3a3   : > { %3078 = vmatprep.subr.bf16.mxu0 %v3980_v11  ;;  %3108 = vmatprep.subr.bf16.mxu1 %v4619_v40  ;;  %v4635_v11 = vld [vmem:[#allocation33_spill] sm:$0xff] }
 0x3a4   : > { %1427 = vmatprep.mubr.f32.mxu0 %v4614_v5  ;;  %2676 = vmatprep.mubr.msk.f32.mxu1 %vm3675_vm1, %v4614_v5  ;;  %v4654_v10 = vld [vmem:[#allocation41_spill] sm:$0xff] }
 0x3a6   : > { %3080 = vmatpush1.bf16.msra.mxu0 %v3986_v16  ;;  %3110 = vmatpush3.bf16.msra.mxu1 %v4006_v38  ;;  %v4636_v16 = vld [vmem:[#allocation34_spill] sm:$0xff] }
 0x3a7   : > { %3082 = vmatprep.subr.bf16.mxu0 %v3989_v17  ;;  %3111 = vmatprep.subr.bf16.mxu1 %v4619_v40  ;;  %v4637_v17 = vld [vmem:[#allocation35_spill] sm:$0xff] }
 0x3aa   : > { %3084 = vmatpush1.bf16.msra.mxu0 %v3992_v22  ;;  %3113 = vmatpush3.bf16.msra.mxu1 %v4016_v49  ;;  %v4638_v22 = vld [vmem:[#allocation36_spill] sm:$0xff] }
 0x3ab   : > { %3086 = vmatprep.subr.bf16.mxu0 %v3995_v23  ;;  %3114 = vmatprep.subr.bf16.mxu1 %v4619_v40  ;;  %v4639_v23 = vld [vmem:[#allocation37_spill] sm:$0xff] }
 0x3ae   : > { %3088 = vmatpush1.bf16.msra.mxu0 %v4000_v33  ;;  %3116 = vmatpush3.bf16.msra.mxu1 %v4026_v12  ;;  %v4642_v33 = vld [vmem:[#allocation40_spill] sm:$0xff]  ;;  %v4648_v12 = vld [vmem:[#allocation27_spill] sm:$0xff] }
 0x3af   : > { %3090 = vmatprep.subr.bf16.mxu0 %v4003_v34  ;;  %3117 = vmatprep.subr.bf16.mxu1 %v4619_v40  ;;  %v4644_v34 = vld [vmem:[#allocation26_spill] sm:$0xff] }
 0x3b2   : > { %3092 = vmatpush1.bf16.msra.mxu0 %v4010_v42  ;;  %3119 = vmatpush3.bf16.msra.mxu1 %v4036_v24  ;;  %v4646_v42 = vld [vmem:[#allocation29_spill] sm:$0xff] }
 0x3b3   : > { %3094 = vmatprep.subr.bf16.mxu0 %v4013_v43  ;;  %3120 = vmatprep.subr.bf16.mxu1 %v4619_v40  ;;  %v4647_v43 = vrot.slane %v4646_v42, %v4644_v34 }
 0x3b6   : > { %3096 = vmatpush1.bf16.msra.mxu0 %v4020_v0  ;;  %3122 = vmatpush3.bf16.msra.mxu1 %v4044_v31 }
 0x3b7   : > { %3098 = vmatprep.subr.bf16.mxu0 %v4023_v3  ;;  %3123 = vmatprep.subr.bf16.mxu1 %v4619_v40 }
 0x3ba   : > { %3100 = vmatpush1.bf16.msra.mxu0 %v4030_v18  ;;  %3125 = vmatpush3.bf16.msra.mxu1 %v4053_v45 }
 0x3bb   : > { %3102 = vmatprep.subr.bf16.mxu0 %v4033_v19  ;;  %3126 = vmatprep.subr.bf16.mxu1 %v4619_v40  ;;  %v4650_v19 = vrot.slane %v4646_v42, %v4648_v12  ;;  %v1951_v42 = vld [vmem:[%s4543_s9 + $0x38] sm:$0xff] (%p685_p2) }
 0x3be   : > { %3104 = vmatpush1.bf16.msra.mxu0 %v4040_v29  ;;  %3128 = vmatpush3.bf16.msra.mxu1 %v4065_v14 }
 0x3bf   : > { %3130 = vmatprep.subr.bf16.mxu0 %v4046_v35  ;;  %3161 = vmatprep.subr.bf16.mxu1 %v4619_v40 }
 0x3c1   : > { %1428 = vmatmul.mubr.f32.vlgmr.msra.gmra.mrb[4].mxu0 %v4237_v61  ;;  %2677 = vmatmul.mubr.f32.vlgmr.msra.gmra.mrb[6].mxu1 %v4237_v61 }
 0x3c2   : > { %3132 = vmatpush1.bf16.msra.mxu0 %v4050_v44  ;;  %3163 = vmatpush3.bf16.msra.mxu1 %v4075_v36  ;;  %v4651_v36 = vld [vmem:[#allocation30_spill] sm:$0xff] }
 0x3c3   : > { %3134 = vmatprep.subr.bf16.mxu0 %v4056_v50  ;;  %3164 = vmatprep.subr.bf16.mxu1 %v4619_v40 }
 0x3c4   : > { %1616 = vmatprep.mubr.f32.mxu0 %v4614_v5  ;;  %2711 = vmatprep.mubr.msk.f32.mxu1 %vm3675_vm1, %v4614_v5 }
 0x3c6   : > { %3136 = vmatpush1.bf16.msra.mxu0 %v4061_v13  ;;  %3166 = vmatpush3.bf16.msra.mxu1 %v4086_v63  ;;  %v4652_v63 = vld [vmem:[#allocation31_spill] sm:$0xff] }
 0x3c7   : > { %3138 = vmatprep.subr.bf16.mxu0 %v4068_v20  ;;  %3167 = vmatprep.subr.bf16.mxu1 %v4619_v40 }
 0x3ca   : > { %3140 = vmatpush1.bf16.msra.mxu0 %v4072_v32  ;;  %3169 = vmatpush3.bf16.msra.mxu1 %v4094_v7 }
 0x3cb   : > { %3142 = vmatprep.subr.bf16.mxu0 %v4078_v37  ;;  %3170 = vmatprep.subr.bf16.mxu1 %v4619_v40  ;;  %v1069_v37 = vadd.f32 %v1068_v2, %v4651_v36 }
 0x3ce   : > { %3144 = vmatpush1.bf16.msra.mxu0 %v4083_v62  ;;  %3172 = vmatpush3.bf16.msra.mxu1 %v4098_v25 }
 0x3cf   : > { %3146 = vmatprep.subr.bf16.mxu0 %v4103_v28  ;;  %3173 = vmatprep.subr.bf16.mxu1 %v4619_v40 }
 0x3d2   : > { %3148 = vmatpush1.bf16.msra.mxu0 %v4105_v46  ;;  %3175 = vmatpush3.bf16.msra.mxu1 %v4108_v6  ;;  %v1698_v6 = vld [vmem:[%s4334_s3] sm:$0xff] }
 0x3d3   : > { %3150 = vmatprep.subr.bf16.mxu0 %v4112_v58  ;;  %3176 = vmatprep.subr.bf16.mxu1 %v4619_v40  ;;  %v4640_v58 = vld [vmem:[#allocation38_spill] sm:$0xff] }
 0x3d6   : > { %3152 = vmatpush1.bf16.msra.mxu0 %v4115_v57  ;;  %3178 = vmatpush3.bf16.msra.mxu1 %v4635_v11  ;;  %v4643_v57 = vld [vmem:[#allocation28_spill] sm:$0xff]  ;;  %v4655_v11 = vld [vmem:[#allocation42_spill] sm:$0xff] }
 0x3d7   : > { %3154 = vmatprep.subr.bf16.mxu0 %v4636_v16  ;;  %3179 = vmatprep.subr.bf16.mxu1 %v4619_v40  ;;  %v4645_v38 = vrot.slane %v4643_v57, %v4644_v34  ;;  %v4649_v18 = vrot.slane %v4643_v57, %v4648_v12  ;;  %v1950_v34 = vld [vmem:[%s4543_s9 + $0x30] sm:$0xff] (%p685_p2)  ;;  %v2080_v12 = vld [vmem:[%s4545_s11] sm:$0xff] (%p685_p2) }
 0x3d9   : > { %v4319_v49 = vadd.f32 %v4647_v43, %v4645_v38  ;;  %v4327_v24 = vadd.f32 %v4650_v19, %v4649_v18  ;;  %v4661_v38 = vld [vmem:[#allocation48_spill] sm:$0xff]  ;;  %v4662_v43 = vld [vmem:[#allocation49_spill] sm:$0xff]  ;;  %v4664_v18 = vld [vmem:[#allocation51_spill] sm:$0xff] }
 0x3da   : > { %3156 = vmatpush1.bf16.msra.mxu0 %v4637_v17  ;;  %3181 = vmatpush3.bf16.msra.mxu1 %v4638_v22  ;;  %v4656_v17 = vld [vmem:[#allocation43_spill] sm:$0xff]  ;;  %v4657_v22 = vld [vmem:[#allocation44_spill] sm:$0xff] }
 0x3db   : > { %3158 = vmatprep.subr.bf16.mxu0 %v4639_v23  ;;  %3182 = vmatprep.subr.bf16.mxu1 %v4619_v40  ;;  %v4658_v23 = vld [vmem:[#allocation45_spill] sm:$0xff] }
 0x3de   : > { %3160 = vmatpush1.bf16.msra.mxu0 %v4640_v58  ;;  %3184 = vmatpush3.bf16.msra.mxu1 %v4641_v30  ;;  %v4659_v58 = vld [vmem:[#allocation46_spill] sm:$0xff] }
 0x3df   : > { %3186 = vmatprep.subr.bf16.mxu0 %v4642_v33  ;;  %3217 = vmatprep.subr.bf16.mxu1 %v4619_v40  ;;  %v4660_v33 = vld [vmem:[#allocation47_spill] sm:$0xff] }
 0x474   : > { %v1215_v0 = vpop.f32.mrb[2].mxu0  ;;  %v1286_v3 = vpop.f32.mrb[4].mxu1 }
 0x475   : > { %v3306_v29 = vadd.f32 %v4319_v49, %v1215_v0  ;;  %v1217_v31 = vpop.f32.mrb[3].mxu0  ;;  %v2643_v35 = vpop.f32.mrb[5].mxu1  ;;  %v1287_v7 = vadd.f32 %v1286_v3, %v4652_v63  ;;  %v4663_v3 = vld [vmem:[#allocation50_spill] sm:$0xff] }
 0x476   : > { %v3308_v45 = vadd.f32 %v4327_v24, %v1217_v31  ;;  %v4665_v31 = vld [vmem:[#allocation52_spill] sm:$0xff] }
 0x477   : > { %v2276_v44 = vmul.f32 -1.442695, %v3306_v29  ;;  %v1700_v29 = vld [vmem:[%s4334_s3 + $0x10] sm:$0xff] }
 0x478   : > { %v2277_v50 = vmul.f32 -1.442695, %v3308_v45  ;;  %v4666_v45 = vld [vmem:[#allocation53_spill] sm:$0xff] }
 0x479   : > { %3371 = vpow2.f32 %v2276_v44 }
 0x47a   : > { %3373 = vpow2.f32 %v2277_v50  ;;  %v4667_v50 = vld [vmem:[#allocation54_spill] sm:$0xff] }
 0x483   : > { %v3372_v13 = vpop.eup %3371 }
 0x484   : > { %v1294_v14 = vadd.f32 1.0, %v3372_v13  ;;  %v3374_v20 = vpop.eup %3373  ;;  %v4668_v13 = vld [vmem:[#allocation55_spill] sm:$0xff] }
 0x485   : > { %v1301_v32 = vadd.f32 1.0, %v3374_v20  ;;  %v4670_v20 = vld [vmem:[#allocation57_spill] sm:$0xff] }
 0x486   : > { %3375 = vrcp.f32 %v1294_v14  ;;  %v4669_v14 = vld [vmem:[#allocation56_spill] sm:$0xff] }
 0x487   : > { %3377 = vrcp.f32 %v1301_v32  ;;  %v4671_v32 = vld [vmem:[#allocation58_spill] sm:$0xff] }
 0x490   : > { %v3376_v62 = vpop.eup %3375 }
 0x491   : > { %v1304_v25 = vmul.f32 %v3376_v62, %v1069_v37  ;;  %v3378_v41 = vpop.eup %3377  ;;  %v4672_v62 = vld [vmem:[#allocation59_spill] sm:$0xff] }
 0x492   : > { %v1307_v15 = vsub.f32 1.0, %v3378_v41  ;;  %v1309_v55 = vmul.f32 %v4653_v8, %v3378_v41 }
 0x493   : > { %v1305_v28 = vadd.f32 %v1304_v25, %v1287_v7  ;;  %v4673_v7 = vld [vmem:[#allocation60_spill] sm:$0xff]  ;;  %v4674_v25 = vld [vmem:[#allocation61_spill] sm:$0xff] }
 0x494   : > { %v1429_v46 = vpop.f32.mrb[4].mxu0  ;;  %v1500_v9 = vpop.f32.mrb[6].mxu1 }
 0x495   : > { %3379 = vtanh.f32 %v1305_v28  ;;  %v1430_v47 = vadd.f32 %v1429_v46, %v3916_v53  ;;  %v1431_v60 = vpop.f32.mrb[5].mxu0  ;;  %v2678_v48 = vpop.f32.mrb[7].mxu1  ;;  %v1501_v0 = vadd.f32 %v1500_v9, %v3929_v59  ;;  %v4676_v9 = vld [vmem:[#allocation63_spill] sm:$0xff] }
 0x496   : > { %v1432_v21 = vadd.f32 %v1431_v60, %v3923_v56  ;;  %v1948_v53 = vld [vmem:[%s4543_s9 + $0x20] sm:$0xff] (%p685_p2)  ;;  %v1949_v56 = vld [vmem:[%s4543_s9 + $0x28] sm:$0xff] (%p685_p2) }
 0x497   : > { %v1701_v1 = vadd.f32 %v1698_v6, %v1430_v47  ;;  %v4675_v6 = vld [vmem:[#allocation62_spill] sm:$0xff]  ;;  %v3249_v59 = vpack.c.bf16 (%p685_p2), %v1949_v56, %v1948_v53 }
 0x498   : > { %v1708_v4 = vadd.f32 %v1699_v52, %v1432_v21 }
 0x499   : > { %v2280_v51 = vmul.f32 -1.442695, %v1701_v1 }
 0x49a   : > { %v2281_v39 = vmul.f32 -1.442695, %v1708_v4 }
 0x49b   : > { %3381 = vpow2.f32 %v2280_v51 }
 0x49c   : > { %3383 = vpow2.f32 %v2281_v39 }
 0x49f   : > { %v3380_v26 = vpop.eup %3379 }
 0x4a0   : > { %v1308_v54 = vmul.f32 %v3380_v26, %v1307_v15 }
 0x4a2   : > { %v4341_v27 = vadd.f32 %v1309_v55, %v1308_v54 }
 0x4a4   : > { %1312 = vst [vmem:[%s1311_s12] sm:$0xff] %v4341_v27  ;;  %1617 = vmatmul.mubr.f32.vlgmr.msra.gmra.mrb[6].mxu0 %v4341_v27  ;;  %2712 = vmatmul.mubr.f32.vlgmr.msra.gmra.mrb[8].mxu1 %v4341_v27 }
 0x4a5   : > { %v3382_v2 = vpop.eup %3381  ;;  %3188 = vmatpush1.bf16.msra.mxu0 %v4654_v10  ;;  %3219 = vmatpush3.bf16.msra.mxu1 %v4655_v11 }
 0x4a6   : > { %v1705_v16 = vadd.f32 1.0, %v3382_v2  ;;  %3190 = vmatprep.subr.bf16.mxu0 %v4656_v17  ;;  %3220 = vmatprep.subr.bf16.mxu1 %v4619_v40  ;;  %v3384_v30 = vpop.eup %3383 }
 0x4a7   : > { %1834 = vmatprep.mubr.f32.mxu0 %v4614_v5  ;;  %2746 = vmatprep.mubr.msk.f32.mxu1 %vm3675_vm1, %v4614_v5  ;;  %v1712_v5 = vadd.f32 1.0, %v3384_v30 }
 0x4a8   : > { %3385 = vrcp.f32 %v1705_v16 }
 0x4a9   : > { %3192 = vmatpush1.bf16.msra.mxu0 %v4657_v22  ;;  %3222 = vmatpush3.bf16.msra.mxu1 %v4658_v23  ;;  %3387 = vrcp.f32 %v1712_v5  ;;  %v1947_v5 = vld [vmem:[%s4543_s9 + $0x18] sm:$0xff] (%p685_p2) }
 0x4aa   : > { %3194 = vmatprep.subr.bf16.mxu0 %v4659_v58  ;;  %3223 = vmatprep.subr.bf16.mxu1 %v4619_v40 }
 0x4ad   : > { %3196 = vmatpush1.bf16.msra.mxu0 %v4660_v33  ;;  %3225 = vmatpush3.bf16.msra.mxu1 %v4661_v38  ;;  %v1944_v33 = vld [vmem:[%s4543_s9] sm:$0xff] (%p685_p2)  ;;  %v1946_v38 = vld [vmem:[%s4543_s9 + $0x10] sm:$0xff] (%p685_p2) }
 0x4ae   : > { %3198 = vmatprep.subr.bf16.mxu0 %v4662_v43  ;;  %3226 = vmatprep.subr.bf16.mxu1 %v4619_v40 }
 0x4b1   : > { %3200 = vmatpush1.bf16.msra.mxu0 %v4663_v3  ;;  %3228 = vmatpush3.bf16.msra.mxu1 %v4664_v18  ;;  %v3253_v3 = vpack.c.bf16 (%p685_p2), %v1951_v42, %v1950_v34  ;;  %v1952_v18 = vld [vmem:[%s4543_s9 + $0x40] sm:$0xff] (%p685_p2) }
 0x4b2   : > { %v3386_v19 = vpop.eup %3385  ;;  %3202 = vmatprep.subr.bf16.mxu0 %v4665_v31  ;;  %3229 = vmatprep.subr.bf16.mxu1 %v4619_v40  ;;  %v1953_v31 = vld [vmem:[%s4543_s9 + $0x48] sm:$0xff] (%p685_p2) }
 0x4b3   : > { %v1715_v35 = vmul.f32 %v3386_v19, %v1501_v0  ;;  %v3388_v37 = vpop.eup %3387  ;;  %v3245_v0 = vpack.c.bf16 (%p685_p2), %v1947_v5, %v1946_v38 }
 0x4b4   : > { %v1718_v28 = vsub.f32 1.0, %v3388_v37  ;;  %v1720_v60 = vmul.f32 %v3388_v37, %v4237_v61  ;;  %v2087_v37 = vld [vmem:[%s4545_s11 + $0x38] sm:$0xff] (%p685_p2) }
 0x4b5   : > { %v1716_v44 = vadd.f32 %v1715_v35, %v1700_v29  ;;  %3204 = vmatpush1.bf16.msra.mxu0 %v4666_v45  ;;  %3231 = vmatpush3.bf16.msra.mxu1 %v4667_v50  ;;  %v2083_v29 = vld [vmem:[%s4545_s11 + $0x18] sm:$0xff] (%p685_p2)  ;;  %v2085_v45 = vld [vmem:[%s4545_s11 + $0x28] sm:$0xff] (%p685_p2)  ;;  %v3257_v50 = vpack.c.bf16 (%p685_p2), %v1953_v31, %v1952_v18 }
 0x4b6   : > { %3206 = vmatprep.subr.bf16.mxu0 %v4668_v13  ;;  %3232 = vmatprep.subr.bf16.mxu1 %v4619_v40  ;;  %v1954_v13 = vld [vmem:[%s4543_s9 + $0x50] sm:$0xff] (%p685_p2) }
 0x4b7   : > { %3389 = vtanh.f32 %v1716_v44  ;;  %v2084_v44 = vld [vmem:[%s4545_s11 + $0x20] sm:$0xff] (%p685_p2) }
 0x4b9   : > { %3208 = vmatpush1.bf16.msra.mxu0 %v4669_v14  ;;  %3234 = vmatpush3.bf16.msra.mxu1 %v4670_v20  ;;  %v3281_v14 = vpack.c.bf16 (%p685_p2), %v2085_v45, %v2084_v44  ;;  %v1955_v20 = vld [vmem:[%s4543_s9 + $0x58] sm:$0xff] (%p685_p2) }
 0x4ba   : > { %3210 = vmatprep.subr.bf16.mxu0 %v4671_v32  ;;  %3235 = vmatprep.subr.bf16.mxu1 %v4619_v40  ;;  %v2086_v32 = vld [vmem:[%s4545_s11 + $0x30] sm:$0xff] (%p685_p2) }
 0x4bd   : > { %3212 = vmatpush1.bf16.msra.mxu0 %v4672_v62  ;;  %3237 = vmatpush3.bf16.msra.mxu1 %v4673_v7  ;;  %v3261_v62 = vpack.c.bf16 (%p685_p2), %v1955_v20, %v1954_v13  ;;  %v1956_v7 = vld [vmem:[%s4543_s9 + $0x60] sm:$0xff] (%p685_p2) }
 0x4be   : > { %3214 = vmatprep.subr.bf16.mxu0 %v4674_v25  ;;  %3238 = vmatprep.subr.bf16.mxu1 %v4619_v40  ;;  %v3285_v25 = vpack.c.bf16 (%p685_p2), %v2087_v37, %v2086_v32 }
 0x4c1   : > { %v3390_v46 = vpop.eup %3389  ;;  %3216 = vmatpush1.bf16.msra.mxu0 %v4675_v6  ;;  %3240 = vmatpush3.bf16.msra.mxu1 %v4676_v9  ;;  %v2089_v6 = vld [vmem:[%s4545_s11 + $0x48] sm:$0xff] (%p685_p2) }
 0x4c2   : > { %v1719_v47 = vmul.f32 %v3390_v46, %v1718_v28  ;;  %v1957_v28 = vld [vmem:[%s4543_s9 + $0x68] sm:$0xff] (%p685_p2)  ;;  %v2088_v46 = vld [vmem:[%s4545_s11 + $0x40] sm:$0xff] (%p685_p2) }
 0x4c3   :  { %v3265_v9 = vpack.c.bf16 (%p685_p2), %v1957_v28, %v1956_v7 }
 0x4c4   : > { %v1721_v48 = vadd.f32 %v1720_v60, %v1719_v47   ;;  %v1958_v47 = vld [vmem:[%s4543_s9 + $0x70] sm:$0xff] (%p685_p2)  ;;  %v3289_v60 = vpack.c.bf16 (%p685_p2), %v2089_v6, %v2088_v46 }
 0x4c6   : > { %1835 = vmatmul.mubr.f32.vlgmr.msra.gmra.mrb[6].mxu0 %v1721_v48  ;;  %2747 = vmatmul.mubr.f32.vlgmr.msra.gmra.mrb[10].mxu1 %v1721_v48  ;;  %1934 = vst [vmem:[#allocation19] sm:$0xff] (%p685_p2), %v1721_v48 }
 0x577   : > { %v1689_v21 = vpop.f32.mrb[8].mxu1 }
 0x578   : > { %v2713_v1 = vpop.f32.mrb[9].mxu1  ;;  %v1690_v2 = vadd.f32 %v1689_v21, %v4651_v36  ;;  %v2081_v36 = vld [vmem:[%s4545_s11 + $0x8] sm:$0xff] (%p685_p2)  ;;  %v2090_v21 = vld [vmem:[%s4545_s11 + $0x50] sm:$0xff] (%p685_p2) }
 0x579   :  { %v3273_v19 = vpack.c.bf16 (%p685_p2), %v2081_v36, %v2080_v12 }
 0x57b   :  { %3274 = vmatprep.subr.bf16.mxu1 (%p685_p2), %v3273_v19 }
 0x57c   :  { %3276 = vmatpush3.bf16.msra.mxu1 (%p685_p2), %v3273_v19 }
 0x599   : > { %v1836_v52 = vpop.f32.mrb[6].mxu0  ;;  %v1907_v51 = vpop.f32.mrb[10].mxu1 }
 0x59a   : > { %v3310_v4 = vadd.f32 %v4319_v49, %v1836_v52  ;;  %v1838_v41 = vpop.f32.mrb[7].mxu0  ;;  %v2748_v40 = vpop.f32.mrb[11].mxu1  ;;  %v1908_v11 = vadd.f32 %v1907_v51, %v4652_v63  ;;  %v2082_v63 = vld [vmem:[%s4545_s11 + $0x10] sm:$0xff] (%p685_p2) }
 0x59b   : > { %v3312_v15 = vadd.f32 %v4327_v24, %v1838_v41  ;;  %v3277_v35 = vpack.c.bf16 (%p685_p2), %v2083_v29, %v2082_v63  ;;  %v2093_v41 = vld [vmem:[%s4545_s11 + $0x68] sm:$0xff] (%p685_p2) }
 0x59c   : > { %v2282_v39 = vmul.f32 -1.442695, %v3310_v4  ;;  %v2092_v4 = vld [vmem:[%s4545_s11 + $0x60] sm:$0xff] (%p685_p2) }
 0x59d   : > { %v2283_v26 = vmul.f32 -1.442695, %v3312_v15  ;;  %3278 = vmatprep.subr.bf16.mxu1 (%p685_p2), %v3277_v35  ;;  %v3297_v40 = vpack.c.bf16 (%p685_p2), %v2093_v41, %v2092_v4 }
 0x59e   : > { %3391 = vpow2.f32 %v2282_v39  ;;  %3280 = vmatpush3.bf16.msra.mxu1 (%p685_p2), %v3277_v35 }
 0x59f   : > { %3393 = vpow2.f32 %v2283_v26  ;;  %3282 = vmatprep.subr.bf16.mxu1 (%p685_p2), %v3281_v14 }
 0x5a2   :  { %3284 = vmatpush3.bf16.msra.mxu1 (%p685_p2), %v3281_v14 }
 0x5a3   :  { %3286 = vmatprep.subr.bf16.mxu1 (%p685_p2), %v3285_v25 }
 0x5a6   :  { %3288 = vmatpush3.bf16.msra.mxu1 (%p685_p2), %v3285_v25 }
 0x5a7   :  { %3290 = vmatprep.subr.bf16.mxu1 (%p685_p2), %v3289_v60 }
 0x5a8   : > { %v3392_v54 = vpop.eup %3391 }
 0x5a9   : > { %v1915_v8 = vadd.f32 1.0, %v3392_v54  ;;  %v3394_v61 = vpop.eup %3393 }
 0x5aa   : > { %v1922_v55 = vadd.f32 1.0, %v3394_v61  ;;  %3292 = vmatpush3.bf16.msra.mxu1 (%p685_p2), %v3289_v60 }
 0x5ab   : > { %3395 = vrcp.f32 %v1915_v8 }
 0x5ac   : > { %3397 = vrcp.f32 %v1922_v55 }
 0x5b5   : > { %v3396_v10 = vpop.eup %3395 }
 0x5b6   : > { %v1925_v49 = vmul.f32 %v3396_v10, %v1690_v2  ;;  %v3398_v17 = vpop.eup %3397  ;;  %v4678_v2 = vmov %v1721_v48  ;;  %v1959_v48 = vld [vmem:[%s4543_s9 + $0x78] sm:$0xff] (%p685_p2) }
 0x5b7   : > { %v1928_v24 = vsub.f32 1.0, %v3398_v17  ;;  %v1930_v58 = vmul.f32 %v3398_v17, %v4341_v27  ;;  %v1945_v27 = vld [vmem:[%s4543_s9 + $0x8] sm:$0xff] (%p685_p2)  ;;  %v3269_v52 = vpack.c.bf16 (%p685_p2), %v1959_v48, %v1958_v47  ;;  %v2094_v2 = vld [vmem:[%s4545_s11 + $0x70] sm:$0xff] (%p685_p2)  ;;  %v2095_v10 = vld [vmem:[%s4545_s11 + $0x78] sm:$0xff] (%p685_p2) }
 0x5b8   : > { %v1926_v16 = vadd.f32 %v1925_v49, %v1908_v11  ;;  %v3241_v43 = vpack.c.bf16 (%p685_p2), %v1945_v27, %v1944_v33  ;;  %v3301_v11 = vpack.c.bf16 (%p685_p2), %v2095_v10, %v2094_v2  ;;  %v2287_v49 = vld [vmem:[#allocation16] ss:$0 sm:$0xff] (%p685_p2) }
 0x5ba   : > { %3399 = vtanh.f32 %v1926_v16  ;;  %3242 = vmatprep.subr.bf16.mxu0 (%p685_p2), %v3241_v43 }
 0x5bb   :  { %3244 = vmatpush3.bf16.msra.mxu0 (%p685_p2), %v3241_v43 }
 0x5bc   :  { %3246 = vmatprep.subr.bf16.mxu0 (%p685_p2), %v3245_v0 }
 0x5bf   :  { %3248 = vmatpush3.bf16.msra.mxu0 (%p685_p2), %v3245_v0 }
 0x5c0   :  { %3250 = vmatprep.subr.bf16.mxu0 (%p685_p2), %v3249_v59 }
 0x5c3   :  { %687 = sbr.rel (!%p685_p2) target bundleno = 633 (0x279), region = 133  ;;  %3252 = vmatpush3.bf16.msra.mxu0 (%p685_p2), %v3249_v59 }
 0x5c4   : > { %v3400_v22 = vpop.eup %3399  ;;  %3254 = vmatprep.subr.bf16.mxu0 (%p685_p2), %v3253_v3 }
 0x5c5   : > { %v1929_v23 = vmul.f32 %v3400_v22, %v1928_v24 }
 0x5c7   : > { %v1931_v30 = vadd.f32 %v1930_v58, %v1929_v23   ;;  %3256 = vmatpush3.bf16.msra.mxu0 (%p685_p2), %v3253_v3 }
 0x5c8   :  { %3258 = vmatprep.subr.bf16.mxu0 (%p685_p2), %v3257_v50 }
 0x5c9   : > { %2286 = vst [vmem:[%s1311_s12 + $0x8] sm:$0xff] %v1931_v30  ;;  %v4677_v1 = vmov %v1931_v30  ;;  %1935 = vst [vmem:[#allocation19 + $0x8] sm:$0xff] (%p685_p2), %v1931_v30 }
 0x5ca   :  { %v2091_v1 = vld [vmem:[%s4545_s11 + $0x58] sm:$0xff]  ;;  %s3676_s11 = smov [#allocation19]  }
 0x5cb   :  { %3260 = vmatpush3.bf16.msra.mxu0 %v3257_v50  ;;  %v3293_v51 = vpack.c.bf16 %v2091_v1, %v2090_v21  ;;  %s2223_s0 = sshll.u32 %s3676_s11, 4  ;;  %s2224_s0 = int_to_ptr.vmem [resolvable:$true] %s2223_s0 }
 0x5cc   :  { %3262 = vmatprep.subr.bf16.mxu0 %v3261_v62  ;;  %s3599_s15 = scalar_lea.vmem %s2224_s0, 256  ;;  %p3604_p4 = scmp.lt.s32.totalorder %s2224_s0, %s2224_s0 }
 0x5cd   :  { %3294 = vmatprep.subr.bf16.mxu1 %v3293_v51  ;;  %p3600_p3 = scmp.ne.s32.totalorder %s2224_s0, %s3599_s15  ;;  %p3605_p5 = scmp.lt.s32.totalorder %s3599_s15, %s3599_s15 }
 0x5ce   :  { %3296 = vmatpush3.bf16.msra.mxu1 %v3293_v51 }
 0x5cf   :  { %3264 = vmatpush3.bf16.msra.mxu0 %v3261_v62  ;;  %3298 = vmatprep.subr.bf16.mxu1 %v3297_v40  ;;  %p3606_p6 = por %p3605_p5, %p3604_p4 }
 0x5d0   :  { %v1936_v57 = vld [vmem:[#allocation3] sm:$0xff]  ;;  %3266 = vmatprep.subr.bf16.mxu0 %v3265_v9  ;;  %v1937_v39 = vld [vmem:[#allocation3 + $0x8] sm:$0xff]  ;;  %v1938_v15 = vld [vmem:[#allocation3 + $0x10] sm:$0xff] }
 0x5d1   :  { %2781 = vmatprep.mubr.f32.mxu0 %v1936_v57  ;;  %v1939_v26 = vld [vmem:[#allocation3 + $0x18] sm:$0xff]  ;;  %v1940_v54 = vld [vmem:[#allocation3 + $0x20] sm:$0xff]  ;;  %v1941_v8 = vld [vmem:[#allocation3 + $0x28] sm:$0xff]  ;;  %p3607_p7 = pnand %p3606_p6, %p3600_p3 }
 0x5d2   :  { %3300 = vmatpush3.bf16.msra.mxu1 %v3297_v40  ;;  %v1942_v61 = vld [vmem:[#allocation3 + $0x30] sm:$0xff]  ;;  %v1943_v55 = vld [vmem:[#allocation3 + $0x38] sm:$0xff] }
 0x5d3   :  { %3268 = vmatpush3.bf16.msra.mxu0 %v3265_v9  ;;  %3302 = vmatprep.subr.bf16.mxu1 %v3301_v11 }
 0x5d4   :  { %3270 = vmatprep.subr.bf16.mxu0 %v3269_v52 }
 0x5d6   :  { %3304 = vmatpush3.bf16.msra.mxu1 %v3301_v11 }
 0x5d7   :  { %3272 = vmatpush3.bf16.msra.mxu0 %v3269_v52 }
 0x5da   :  { %2782 = vmatmul.mubr.f32.vlgmr.msra.gmra.mrb[0].mxu0 %v1937_v39 }
 0x5db   :  { %2784 = vmatprep.mubr.f32.mxu0 %v1938_v15 }
 0x5de   :  { %2785 = vmatmul.mubr.f32.gmra.mrb[2].mxu0 %v1939_v26 }
 0x5df   :  { %2787 = vmatprep.mubr.f32.mxu0 %v1940_v54 }
 0x5e2   :  { %2788 = vmatmul.mubr.f32.gmra.mrb[4].mxu0 %v1941_v8 }
 0x5e3   :  { %2790 = vmatprep.mubr.f32.mxu0 %v1942_v61 }
 0x5e6   :  { %2791 = vmatmul.mubr.f32.gmra.mrb[6].mxu0 %v1943_v55 }
 0x6ad   :  { %v2783_v16 = vpop.f32.mrb[0].mxu0 }
 0x6ae   :  { %v2039_v17 = vadd.f32 %v2783_v16, %v2287_v49  ;;  %v2033_v24 = vpop.f32.mrb[1].mxu0 }
 0x6af   :  { %v2034_v22 = vadd.f32 %v2287_v49, %v2033_v24 }
 0x6b0   :  { %v2073_v30 = vmax.f32 %v2039_v17, 0.0 }
 0x6b1   :  { %v2786_v23 = vpop.f32.mrb[2].mxu0  ;;  %v2072_v58 = vmax.f32 %v2034_v22, 0.0 }
 0x6b2   :  { %v2049_v33 = vadd.f32 %v2786_v23, %v2287_v49  ;;  %v2043_v27 = vpop.f32.mrb[3].mxu0 }
 0x6b3   :  { %v2044_v38 = vadd.f32 %v2287_v49, %v2043_v27  ;;  %2825 = vmatprep.mubr.f32.mxu1 %v2072_v58 }
 0x6b4   :  { %2826 = vmatmul.mubr.f32.vlgmr.msra.gmra.mrb[0].mxu1 %v2073_v30  ;;  %v2075_v0 = vmax.f32 %v2049_v33, 0.0 }
 0x6b5   :  { %v2074_v43 = vmax.f32 %v2044_v38, 0.0  ;;  %v2789_v5 = vpop.f32.mrb[4].mxu0 }
 0x6b6   :  { %v2059_v53 = vadd.f32 %v2789_v5, %v2287_v49  ;;  %v2053_v56 = vpop.f32.mrb[5].mxu0 }
 0x6b7   :  { %v2054_v59 = vadd.f32 %v2287_v49, %v2053_v56  ;;  %2828 = vmatprep.mubr.f32.mxu1 %v2074_v43 }
 0x6b8   :  { %2829 = vmatmul.mubr.f32.gmra.mrb[2].mxu1 %v2075_v0  ;;  %v2077_v42 = vmax.f32 %v2059_v53, 0.0 }
 0x6b9   :  { %v2076_v57 = vmax.f32 %v2054_v59, 0.0  ;;  %v2792_v34 = vpop.f32.mrb[6].mxu0 }
 0x6ba   :  { %v2069_v12 = vadd.f32 %v2792_v34, %v2287_v49  ;;  %v2063_v36 = vpop.f32.mrb[7].mxu0 }
 0x6bb   :  { %v2064_v63 = vadd.f32 %v2287_v49, %v2063_v36  ;;  %2831 = vmatprep.mubr.f32.mxu1 %v2076_v57 }
 0x6bc   :  { %2832 = vmatmul.mubr.f32.gmra.mrb[4].mxu1 %v2077_v42  ;;  %v2079_v18 = vmax.f32 %v2069_v12, 0.0 }
 0x6bd   :  { %v2078_v3 = vmax.f32 %v2064_v63, 0.0 }
 0x6bf   :  { %2834 = vmatprep.mubr.f32.mxu1 %v2078_v3 }
 0x6c0   :  { %2835 = vmatmul.mubr.f32.gmra.mrb[6].mxu1 %v2079_v18 }
 0x6c1   :  { %3610 = shalt.err (!%p3607_p7)
}
 0x6c2   :  { %s3611_s20 = scalar_lea.hbm %s4548_s14, 256 }
 0x6c3   :  { %p3612_p8 = scmp.ne.s32.totalorder %s4548_s14, %s3611_s20  ;;  %p3615_p9 = scmp.lt.u32.totalorder %s3611_s20, %s4548_s14 }
 0x6c5   :  { %p3617_p10 = pnand %p3615_p9, %p3612_p8 }
 0x6c7   :  { %3620 = shalt.err (!%p3617_p10)
}
 0x6c8   :  { %2229 = dma.vmem_to_hbm [thread:$0]  %s2224_s0, 256, %s4548_s14, [#allocation6], %s3664_s10, %s3664_s10, %s3665_s22   ;;  %v2288_v19 = vld [vmem:[#allocation18] ss:$0 sm:$0xff] }
 0x787   :  { %v2827_v29 = vpop.f32.mrb[0].mxu1 }
 0x788   :  { %v2175_v31 = vadd.f32 %v2827_v29, %v2288_v19  ;;  %v2169_v35 = vpop.f32.mrb[1].mxu1 }
 0x789   :  { %v2170_v44 = vadd.f32 %v2288_v19, %v2169_v35 }
 0x78a   :  { %2209 = vst [vmem:[%s4547_s13 + $0x8] sm:$0xff] %v2175_v31 }
 0x78b   :  { %2208 = vst [vmem:[%s4547_s13] sm:$0xff] %v2170_v44  ;;  %v2830_v45 = vpop.f32.mrb[2].mxu1 }
 0x78c   :  { %v2185_v50 = vadd.f32 %v2830_v45, %v2288_v19  ;;  %v2179_v13 = vpop.f32.mrb[3].mxu1 }
 0x78d   :  { %v2180_v14 = vadd.f32 %v2288_v19, %v2179_v13 }
 0x78e   :  { %2211 = vst [vmem:[%s4547_s13 + $0x18] sm:$0xff] %v2185_v50 }
 0x78f   :  { %2210 = vst [vmem:[%s4547_s13 + $0x10] sm:$0xff] %v2180_v14  ;;  %v2833_v20 = vpop.f32.mrb[4].mxu1 }
 0x790   :  { %v2195_v32 = vadd.f32 %v2833_v20, %v2288_v19  ;;  %v2189_v37 = vpop.f32.mrb[5].mxu1 }
 0x791   :  { %v2190_v62 = vadd.f32 %v2288_v19, %v2189_v37 }
 0x792   :  { %2213 = vst [vmem:[%s4547_s13 + $0x28] sm:$0xff] %v2195_v32 }
 0x793   :  { %2212 = vst [vmem:[%s4547_s13 + $0x20] sm:$0xff] %v2190_v62  ;;  %v2836_v7 = vpop.f32.mrb[6].mxu1 }
 0x794   :  { %v2205_v25 = vadd.f32 %v2836_v7, %v2288_v19  ;;  %v2199_v28 = vpop.f32.mrb[7].mxu1 }
 0x795   :  { %v2200_v46 = vadd.f32 %v2288_v19, %v2199_v28 }
 0x796   :  { %2215 = vst [vmem:[%s4547_s13 + $0x38] sm:$0xff] %v2205_v25 }
 0x797   :  { %2214 = vst [vmem:[%s4547_s13 + $0x30] sm:$0xff] %v2200_v46 }
 0x798   :  { %3643 = dma.done.wait [#allocation6], 256  }
 0x799   :  { %3644 = vsyncadd [#allocation6], 4294967040 }
 0x79a   :  { %2235 = vsyncpa [#allocation5], 1 }
 0x79b   :  { %2236 = vsyncpa [#allocation8], 1 }
 0x79c   :  { %2237 = vsyncpa [#allocation11], 1 }
 0x79d   :  { %2238 = vsyncpa [#allocation14], 1 }
 0x79e   :  { %2239 = vsyncpa [#allocation17], 1 }
 0x79f   :  { %2240 = vsyncpa [#allocation6], 1 }

</bundles_post_ra>
